<compile_context>
chip_gen: v7x
topology: tpu7x:2x2x1
jax: 0.10.0
libtpu: 0.0.40
codegen_flags: <defaults>
</compile_context>

<pallas_src>
import functools

import jax
import jax.numpy as jnp
from jax.experimental import pallas as pl
from jax.experimental.pallas import tpu as pltpu

# ----------------------------- model config ---------------------------------
SEQ = 8           # sequence length (PyTorch default would be 500)
INPUT_SIZE = 3    # input_shape[1] in the PyTorch module
HIDDEN = 32       # self.units (PyTorch default would be 500)
BATCH = 1         # the module's forward only works with batch=1
GP = 128          # per-gate padded lane width (lane-aligned gate blocks)

assert HIDDEN <= GP, "gate padding scheme assumes hidden <= 128"


# ------------------------------- kernel --------------------------------------
def manual_model_kernel(x_ref,
                        wih0_ref, whh0_ref, b0_ref,
                        wih1_ref, b1_ref,
                        wih2_ref, b2_ref,
                        wout_ref, bout_ref,
                        out_ref):
    S = x_ref.shape[0]
    gp = whh0_ref.shape[0]           # padded hidden width (= GP = 128)

    def sig(v):
        # sigmoid(x) = 0.5 * tanh(0.5 * x) + 0.5  (single EUP transcendental)
        return 0.5 * jnp.tanh(0.5 * v) + 0.5

    def lstm_cell(xg, h, c, whh, b):
        # xg: precomputed x_t @ W_ih (1, 4*gp); gate order [i, f, g, o].
        gates = xg + jnp.dot(h, whh, preferred_element_type=jnp.float32) + b
        i = sig(gates[:, 0 * gp:1 * gp])        # lane-aligned slices (0/128/256/384)
        f = sig(gates[:, 1 * gp:2 * gp])
        g = jnp.tanh(gates[:, 2 * gp:3 * gp])
        o = sig(gates[:, 3 * gp:4 * gp])
        c_new = f * c + i * g
        h_new = o * jnp.tanh(c_new)
        return h_new, c_new

    def lstm_first_step(xg, b):
        # Single step from a zero (h, c): the h @ W_hh term and the forget gate
        # are identically zero contributions, so skip them.
        gates = xg + b
        i = sig(gates[:, 0 * gp:1 * gp])
        g = jnp.tanh(gates[:, 2 * gp:3 * gp])
        o = sig(gates[:, 3 * gp:4 * gp])
        return o * jnp.tanh(i * g)

    # ---- stage 0: LSTM over the full input sequence --------------------------
    whh0 = whh0_ref[...]
    b0 = b0_ref[...]
    # Hoist the input projection out of the recurrence: one (S, K) x (K, 4*gp)
    # matmul instead of S tiny matmuls on the serial chain.
    xproj = jnp.dot(x_ref[...], wih0_ref[...], preferred_element_type=jnp.float32)

    h = jnp.zeros((1, gp), jnp.float32)
    c = jnp.zeros((1, gp), jnp.float32)
    # Full unroll (SEQ static) with static sublane slices; equivalent to
    # lax.fori_loop(..., unroll=True) but with constant slice offsets.
    for t in range(S):
        h, c = lstm_cell(xproj[t:t + 1, :], h, c, whh0, b0)
    h1 = h

    # ---- stage 1: single step on tanh(h1), zero initial state ---------------
    out1 = jnp.tanh(h1)
    xg2 = jnp.dot(out1, wih1_ref[...], preferred_element_type=jnp.float32)
    h2 = lstm_first_step(xg2, b1_ref[...])

    # ---- stage 2: single step on tanh(h2), zero initial state ---------------
    out2 = jnp.tanh(h2)
    xg3 = jnp.dot(out2, wih2_ref[...], preferred_element_type=jnp.float32)
    h3 = lstm_first_step(xg3, b2_ref[...])

    # NOTE: PyTorch's tanh(h3) + dropout result is unused -> not computed.
    # ---- output head: sigmoid(Linear(h3)) on the VPU/XLU ---------------------
    y = jnp.sum(h3 * wout_ref[...], axis=-1, keepdims=True) + bout_ref[...]
    out_ref[...] = sig(y)


# --------------------------- padding helpers ---------------------------------
def _pad_gate_cols(w, hidden=HIDDEN, gp=GP):
    """(K, 4*hidden) -> (K, 4*gp), each gate in its own 128-lane-aligned block."""
    out = jnp.zeros((w.shape[0], 4 * gp), w.dtype)
    for g in range(4):
        out = out.at[:, g * gp:g * gp + hidden].set(w[:, g * hidden:(g + 1) * hidden])
    return out


def _pad_rows(w, rows=GP):
    """Zero-pad the contraction (row) axis up to `rows`."""
    return jnp.zeros((rows, w.shape[1]), w.dtype).at[:w.shape[0], :].set(w)


# ------------------------------- wrapper --------------------------------------
@jax.jit
def manual_model_forward(x, params):
    """x: (BATCH=1, SEQ, INPUT_SIZE) f32.  Returns (1, 1) f32 (sigmoid prob)."""
    x2d = x.reshape(SEQ, INPUT_SIZE)  # batch=1 squeezed

    # Pad gate blocks to 128 lanes each; pad the h-contraction axis to 128 rows.
    wih0p = _pad_gate_cols(params["wih0"])                 # (INPUT_SIZE, 4*GP)
    whh0p = _pad_rows(_pad_gate_cols(params["whh0"]))      # (GP, 4*GP)
    b0p = _pad_gate_cols(params["b0"])                     # (1, 4*GP)
    wih1p = _pad_rows(_pad_gate_cols(params["wih1"]))      # (GP, 4*GP)
    b1p = _pad_gate_cols(params["b1"])
    wih2p = _pad_rows(_pad_gate_cols(params["wih2"]))      # (GP, 4*GP)
    b2p = _pad_gate_cols(params["b2"])
    woutp = jnp.zeros((1, GP), jnp.float32).at[:, :HIDDEN].set(
        params["wout"].reshape(1, HIDDEN))                 # (1, GP)
    boutp = params["bout"]                                 # (1, 1)
    # NOTE: whh1 / whh2 are mathematically dead for this forward (stages 1/2
    # take a single step from a zero hidden state), so they are not passed in.

    inputs = (x2d,
              wih0p, whh0p, b0p,
              wih1p, b1p,
              wih2p, b2p,
              woutp, boutp)
    vmem = pl.BlockSpec(memory_space=pltpu.MemorySpace.VMEM)
    out = pl.pallas_call(
        manual_model_kernel,
        out_shape=jax.ShapeDtypeStruct((1, 1), jnp.float32),
        in_specs=[vmem] * len(inputs),
        out_specs=vmem,
    )(*inputs)
    return out


# ------------------------- pure-JAX reference ---------------------------------
def reference_forward(x, params):
    H = HIDDEN

    def lstm_cell(x_t, h, c, wih, whh, b):
        gates = x_t @ wih + h @ whh + b
        i = jax.nn.sigmoid(gates[:, 0 * H:1 * H])
        f = jax.nn.sigmoid(gates[:, 1 * H:2 * H])
        g = jnp.tanh(gates[:, 2 * H:3 * H])
        o = jax.nn.sigmoid(gates[:, 3 * H:4 * H])
        c_new = f * c + i * g
        return o * jnp.tanh(c_new), c_new

    x2d = x.reshape(SEQ, INPUT_SIZE)
    z = jnp.zeros((1, H), jnp.float32)
    h, c = z, z
    for t in range(SEQ):
        h, c = lstm_cell(x2d[t:t + 1], h, c, params["wih0"], params["whh0"], params["b0"])
    out1 = jnp.tanh(h)
    h2, _ = lstm_cell(out1, z, z, params["wih1"], params["whh1"], params["b1"])
    out2 = jnp.tanh(h2)
    h3, _ = lstm_cell(out2, z, z, params["wih2"], params["whh2"], params["b2"])
    y = h3 @ params["wout"] + params["bout"]
    return jax.nn.sigmoid(y)


# ------------------------------- init -----------------------------------------
def init_params(key, hidden=HIDDEN, input_size=INPUT_SIZE):
    """Deterministic init mimicking PyTorch LSTM/Linear uniform(-k, k)."""
    keys = jax.random.split(key, 16)
    k_lstm = 1.0 / jnp.sqrt(hidden)
    k_lin = 1.0 / jnp.sqrt(hidden)

    def u(k, shape, scale):
        return jax.random.uniform(k, shape, jnp.float32, -scale, scale)

    params = {
        # stage 0: input_size -> hidden   (weights stored transposed: (in, 4H))
        "wih0": u(keys[0], (input_size, 4 * hidden), k_lstm),
        "whh0": u(keys[1], (hidden, 4 * hidden), k_lstm),
        "b0":   u(keys[2], (1, 4 * hidden), k_lstm) + u(keys[3], (1, 4 * hidden), k_lstm),
        # stage 1: hidden -> hidden
        "wih1": u(keys[4], (hidden, 4 * hidden), k_lstm),
        "whh1": u(keys[5], (hidden, 4 * hidden), k_lstm),
        "b1":   u(keys[6], (1, 4 * hidden), k_lstm) + u(keys[7], (1, 4 * hidden), k_lstm),
        # stage 2: hidden -> hidden
        "wih2": u(keys[8], (hidden, 4 * hidden), k_lstm),
        "whh2": u(keys[9], (hidden, 4 * hidden), k_lstm),
        "b2":   u(keys[10], (1, 4 * hidden), k_lstm) + u(keys[11], (1, 4 * hidden), k_lstm),
        # output head: hidden -> 1
        "wout": u(keys[12], (hidden, 1), k_lin),
        "bout": u(keys[13], (1, 1), k_lin),
    }
    return params


if __name__ == "__main__":
    key = jax.random.PRNGKey(0)
    k_x, k_p = jax.random.split(key)
    x = jax.random.normal(k_x, (BATCH, SEQ, INPUT_SIZE), jnp.float32)
    params = init_params(k_p)

    out = manual_model_forward(x, params)
    out = jax.block_until_ready(out)

    ref = reference_forward(x, params)
    assert out.shape == (1, 1)
    assert bool(jnp.all(jnp.isfinite(out)))
    assert bool(jnp.all((out >= 0.0) & (out <= 1.0)))
    assert bool(jnp.allclose(out, ref, atol=2e-5, rtol=2e-5)), (out, ref)
    print("KERNEL_OK")
</pallas_src>

<mosaic_0001>
module attributes {stable_mosaic.version = 11 : i64} {
  func.func @manual_model_kernel(%arg0: memref<8x3xf32, #tpu.memory_space<vmem>>, %arg1: memref<3x512xf32, #tpu.memory_space<vmem>>, %arg2: memref<128x512xf32, #tpu.memory_space<vmem>>, %arg3: memref<1x512xf32, #tpu.memory_space<vmem>>, %arg4: memref<128x512xf32, #tpu.memory_space<vmem>>, %arg5: memref<1x512xf32, #tpu.memory_space<vmem>>, %arg6: memref<128x512xf32, #tpu.memory_space<vmem>>, %arg7: memref<1x512xf32, #tpu.memory_space<vmem>>, %arg8: memref<1x128xf32, #tpu.memory_space<vmem>>, %arg9: memref<1x1xf32, #tpu.memory_space<vmem>>, %arg10: memref<1x1xf32, #tpu.memory_space<vmem>>) attributes {dimension_semantics = [], scalar_prefetch = 0 : i64, scratch_operands = 0 : i64, tpu.core_type = #tpu.core_type<tc>} {
    %c0 = arith.constant 0 : index
    %c0_0 = arith.constant 0 : index
    %0 = vector.load %arg2[%c0, %c0_0] : memref<128x512xf32, #tpu.memory_space<vmem>>, vector<128x512xf32>
    %c0_1 = arith.constant 0 : index
    %c0_2 = arith.constant 0 : index
    %1 = vector.load %arg3[%c0_1, %c0_2] : memref<1x512xf32, #tpu.memory_space<vmem>>, vector<1x512xf32>
    %c0_3 = arith.constant 0 : index
    %c0_4 = arith.constant 0 : index
    %2 = vector.load %arg0[%c0_3, %c0_4] : memref<8x3xf32, #tpu.memory_space<vmem>>, vector<8x3xf32>
    %c0_5 = arith.constant 0 : index
    %c0_6 = arith.constant 0 : index
    %3 = vector.load %arg1[%c0_5, %c0_6] : memref<3x512xf32, #tpu.memory_space<vmem>>, vector<3x512xf32>
    %cst = arith.constant dense<0.000000e+00> : vector<8x512xf32>
    %4 = tpu.matmul %2, %3, %cst {dimension_numbers = #tpu.dot_dimension_numbers<[1], [0], [0], [1], [0, 0, 1, 1], [], []>} : vector<8x3xf32>, vector<3x512xf32>, vector<8x512xf32> -> vector<8x512xf32>
    %cst_7 = arith.constant 0.000000e+00 : f32
    %5 = vector.broadcast %cst_7 : f32 to vector<1x128xf32>
    %cst_8 = arith.constant 0.000000e+00 : f32
    %6 = vector.broadcast %cst_8 : f32 to vector<1x128xf32>
    %7 = vector.extract_strided_slice %4 {offsets = [0, 0], sizes = [1, 512], strides = [1, 1]} : vector<8x512xf32> to vector<1x512xf32>
    %cst_9 = arith.constant dense<0.000000e+00> : vector<1x512xf32>
    %8 = tpu.matmul %5, %0, %cst_9 {dimension_numbers = #tpu.dot_dimension_numbers<[1], [0], [0], [1], [0, 0, 1, 1], [], []>} : vector<1x128xf32>, vector<128x512xf32>, vector<1x512xf32> -> vector<1x512xf32>
    %9 = arith.addf %7, %8 : vector<1x512xf32>
    %10 = arith.addf %9, %1 : vector<1x512xf32>
    %11 = vector.extract_strided_slice %10 {offsets = [0, 0], sizes = [1, 128], strides = [1, 1]} : vector<1x512xf32> to vector<1x128xf32>
    %cst_10 = arith.constant 5.000000e-01 : f32
    %12 = vector.broadcast %cst_10 : f32 to vector<1x128xf32>
    %13 = arith.mulf %12, %11 : vector<1x128xf32>
    %14 = math.tanh %13 : vector<1x128xf32>
    %cst_11 = arith.constant 5.000000e-01 : f32
    %15 = vector.broadcast %cst_11 : f32 to vector<1x128xf32>
    %16 = arith.mulf %15, %14 : vector<1x128xf32>
    %cst_12 = arith.constant 5.000000e-01 : f32
    %17 = vector.broadcast %cst_12 : f32 to vector<1x128xf32>
    %18 = arith.addf %16, %17 : vector<1x128xf32>
    %19 = vector.extract_strided_slice %10 {offsets = [0, 128], sizes = [1, 128], strides = [1, 1]} : vector<1x512xf32> to vector<1x128xf32>
    %cst_13 = arith.constant 5.000000e-01 : f32
    %20 = vector.broadcast %cst_13 : f32 to vector<1x128xf32>
    %21 = arith.mulf %20, %19 : vector<1x128xf32>
    %22 = math.tanh %21 : vector<1x128xf32>
    %cst_14 = arith.constant 5.000000e-01 : f32
    %23 = vector.broadcast %cst_14 : f32 to vector<1x128xf32>
    %24 = arith.mulf %23, %22 : vector<1x128xf32>
    %cst_15 = arith.constant 5.000000e-01 : f32
    %25 = vector.broadcast %cst_15 : f32 to vector<1x128xf32>
    %26 = arith.addf %24, %25 : vector<1x128xf32>
    %27 = vector.extract_strided_slice %10 {offsets = [0, 256], sizes = [1, 128], strides = [1, 1]} : vector<1x512xf32> to vector<1x128xf32>
    %28 = math.tanh %27 : vector<1x128xf32>
    %29 = vector.extract_strided_slice %10 {offsets = [0, 384], sizes = [1, 128], strides = [1, 1]} : vector<1x512xf32> to vector<1x128xf32>
    %cst_16 = arith.constant 5.000000e-01 : f32
    %30 = vector.broadcast %cst_16 : f32 to vector<1x128xf32>
    %31 = arith.mulf %30, %29 : vector<1x128xf32>
    %32 = math.tanh %31 : vector<1x128xf32>
    %cst_17 = arith.constant 5.000000e-01 : f32
    %33 = vector.broadcast %cst_17 : f32 to vector<1x128xf32>
    %34 = arith.mulf %33, %32 : vector<1x128xf32>
    %cst_18 = arith.constant 5.000000e-01 : f32
    %35 = vector.broadcast %cst_18 : f32 to vector<1x128xf32>
    %36 = arith.addf %34, %35 : vector<1x128xf32>
    %37 = arith.mulf %26, %6 : vector<1x128xf32>
    %38 = arith.mulf %18, %28 : vector<1x128xf32>
    %39 = arith.addf %37, %38 : vector<1x128xf32>
    %40 = math.tanh %39 : vector<1x128xf32>
    %41 = arith.mulf %36, %40 : vector<1x128xf32>
    %42 = vector.extract_strided_slice %4 {offsets = [1, 0], sizes = [1, 512], strides = [1, 1]} : vector<8x512xf32> to vector<1x512xf32>
    %cst_19 = arith.constant dense<0.000000e+00> : vector<1x512xf32>
    %43 = tpu.matmul %41, %0, %cst_19 {dimension_numbers = #tpu.dot_dimension_numbers<[1], [0], [0], [1], [0, 0, 1, 1], [], []>} : vector<1x128xf32>, vector<128x512xf32>, vector<1x512xf32> -> vector<1x512xf32>
    %44 = arith.addf %42, %43 : vector<1x512xf32>
    %45 = arith.addf %44, %1 : vector<1x512xf32>
    %46 = vector.extract_strided_slice %45 {offsets = [0, 0], sizes = [1, 128], strides = [1, 1]} : vector<1x512xf32> to vector<1x128xf32>
    %cst_20 = arith.constant 5.000000e-01 : f32
    %47 = vector.broadcast %cst_20 : f32 to vector<1x128xf32>
    %48 = arith.mulf %47, %46 : vector<1x128xf32>
    %49 = math.tanh %48 : vector<1x128xf32>
    %cst_21 = arith.constant 5.000000e-01 : f32
    %50 = vector.broadcast %cst_21 : f32 to vector<1x128xf32>
    %51 = arith.mulf %50, %49 : vector<1x128xf32>
    %cst_22 = arith.constant 5.000000e-01 : f32
    %52 = vector.broadcast %cst_22 : f32 to vector<1x128xf32>
    %53 = arith.addf %51, %52 : vector<1x128xf32>
    %54 = vector.extract_strided_slice %45 {offsets = [0, 128], sizes = [1, 128], strides = [1, 1]} : vector<1x512xf32> to vector<1x128xf32>
    %cst_23 = arith.constant 5.000000e-01 : f32
    %55 = vector.broadcast %cst_23 : f32 to vector<1x128xf32>
    %56 = arith.mulf %55, %54 : vector<1x128xf32>
    %57 = math.tanh %56 : vector<1x128xf32>
    %cst_24 = arith.constant 5.000000e-01 : f32
    %58 = vector.broadcast %cst_24 : f32 to vector<1x128xf32>
    %59 = arith.mulf %58, %57 : vector<1x128xf32>
    %cst_25 = arith.constant 5.000000e-01 : f32
    %60 = vector.broadcast %cst_25 : f32 to vector<1x128xf32>
    %61 = arith.addf %59, %60 : vector<1x128xf32>
    %62 = vector.extract_strided_slice %45 {offsets = [0, 256], sizes = [1, 128], strides = [1, 1]} : vector<1x512xf32> to vector<1x128xf32>
    %63 = math.tanh %62 : vector<1x128xf32>
    %64 = vector.extract_strided_slice %45 {offsets = [0, 384], sizes = [1, 128], strides = [1, 1]} : vector<1x512xf32> to vector<1x128xf32>
    %cst_26 = arith.constant 5.000000e-01 : f32
    %65 = vector.broadcast %cst_26 : f32 to vector<1x128xf32>
    %66 = arith.mulf %65, %64 : vector<1x128xf32>
    %67 = math.tanh %66 : vector<1x128xf32>
    %cst_27 = arith.constant 5.000000e-01 : f32
    %68 = vector.broadcast %cst_27 : f32 to vector<1x128xf32>
    %69 = arith.mulf %68, %67 : vector<1x128xf32>
    %cst_28 = arith.constant 5.000000e-01 : f32
    %70 = vector.broadcast %cst_28 : f32 to vector<1x128xf32>
    %71 = arith.addf %69, %70 : vector<1x128xf32>
    %72 = arith.mulf %61, %39 : vector<1x128xf32>
    %73 = arith.mulf %53, %63 : vector<1x128xf32>
    %74 = arith.addf %72, %73 : vector<1x128xf32>
    %75 = math.tanh %74 : vector<1x128xf32>
    %76 = arith.mulf %71, %75 : vector<1x128xf32>
    %77 = vector.extract_strided_slice %4 {offsets = [2, 0], sizes = [1, 512], strides = [1, 1]} : vector<8x512xf32> to vector<1x512xf32>
    %cst_29 = arith.constant dense<0.000000e+00> : vector<1x512xf32>
    %78 = tpu.matmul %76, %0, %cst_29 {dimension_numbers = #tpu.dot_dimension_numbers<[1], [0], [0], [1], [0, 0, 1, 1], [], []>} : vector<1x128xf32>, vector<128x512xf32>, vector<1x512xf32> -> vector<1x512xf32>
    %79 = arith.addf %77, %78 : vector<1x512xf32>
    %80 = arith.addf %79, %1 : vector<1x512xf32>
    %81 = vector.extract_strided_slice %80 {offsets = [0, 0], sizes = [1, 128], strides = [1, 1]} : vector<1x512xf32> to vector<1x128xf32>
    %cst_30 = arith.constant 5.000000e-01 : f32
    %82 = vector.broadcast %cst_30 : f32 to vector<1x128xf32>
    %83 = arith.mulf %82, %81 : vector<1x128xf32>
    %84 = math.tanh %83 : vector<1x128xf32>
    %cst_31 = arith.constant 5.000000e-01 : f32
    %85 = vector.broadcast %cst_31 : f32 to vector<1x128xf32>
    %86 = arith.mulf %85, %84 : vector<1x128xf32>
    %cst_32 = arith.constant 5.000000e-01 : f32
    %87 = vector.broadcast %cst_32 : f32 to vector<1x128xf32>
    %88 = arith.addf %86, %87 : vector<1x128xf32>
    %89 = vector.extract_strided_slice %80 {offsets = [0, 128], sizes = [1, 128], strides = [1, 1]} : vector<1x512xf32> to vector<1x128xf32>
    %cst_33 = arith.constant 5.000000e-01 : f32
    %90 = vector.broadcast %cst_33 : f32 to vector<1x128xf32>
    %91 = arith.mulf %90, %89 : vector<1x128xf32>
    %92 = math.tanh %91 : vector<1x128xf32>
    %cst_34 = arith.constant 5.000000e-01 : f32
    %93 = vector.broadcast %cst_34 : f32 to vector<1x128xf32>
    %94 = arith.mulf %93, %92 : vector<1x128xf32>
    %cst_35 = arith.constant 5.000000e-01 : f32
    %95 = vector.broadcast %cst_35 : f32 to vector<1x128xf32>
    %96 = arith.addf %94, %95 : vector<1x128xf32>
    %97 = vector.extract_strided_slice %80 {offsets = [0, 256], sizes = [1, 128], strides = [1, 1]} : vector<1x512xf32> to vector<1x128xf32>
    %98 = math.tanh %97 : vector<1x128xf32>
    %99 = vector.extract_strided_slice %80 {offsets = [0, 384], sizes = [1, 128], strides = [1, 1]} : vector<1x512xf32> to vector<1x128xf32>
    %cst_36 = arith.constant 5.000000e-01 : f32
    %100 = vector.broadcast %cst_36 : f32 to vector<1x128xf32>
    %101 = arith.mulf %100, %99 : vector<1x128xf32>
    %102 = math.tanh %101 : vector<1x128xf32>
    %cst_37 = arith.constant 5.000000e-01 : f32
    %103 = vector.broadcast %cst_37 : f32 to vector<1x128xf32>
    %104 = arith.mulf %103, %102 : vector<1x128xf32>
    %cst_38 = arith.constant 5.000000e-01 : f32
    %105 = vector.broadcast %cst_38 : f32 to vector<1x128xf32>
    %106 = arith.addf %104, %105 : vector<1x128xf32>
    %107 = arith.mulf %96, %74 : vector<1x128xf32>
    %108 = arith.mulf %88, %98 : vector<1x128xf32>
    %109 = arith.addf %107, %108 : vector<1x128xf32>
    %110 = math.tanh %109 : vector<1x128xf32>
    %111 = arith.mulf %106, %110 : vector<1x128xf32>
    %112 = vector.extract_strided_slice %4 {offsets = [3, 0], sizes = [1, 512], strides = [1, 1]} : vector<8x512xf32> to vector<1x512xf32>
    %cst_39 = arith.constant dense<0.000000e+00> : vector<1x512xf32>
    %113 = tpu.matmul %111, %0, %cst_39 {dimension_numbers = #tpu.dot_dimension_numbers<[1], [0], [0], [1], [0, 0, 1, 1], [], []>} : vector<1x128xf32>, vector<128x512xf32>, vector<1x512xf32> -> vector<1x512xf32>
    %114 = arith.addf %112, %113 : vector<1x512xf32>
    %115 = arith.addf %114, %1 : vector<1x512xf32>
    %116 = vector.extract_strided_slice %115 {offsets = [0, 0], sizes = [1, 128], strides = [1, 1]} : vector<1x512xf32> to vector<1x128xf32>
    %cst_40 = arith.constant 5.000000e-01 : f32
    %117 = vector.broadcast %cst_40 : f32 to vector<1x128xf32>
    %118 = arith.mulf %117, %116 : vector<1x128xf32>
    %119 = math.tanh %118 : vector<1x128xf32>
    %cst_41 = arith.constant 5.000000e-01 : f32
    %120 = vector.broadcast %cst_41 : f32 to vector<1x128xf32>
    %121 = arith.mulf %120, %119 : vector<1x128xf32>
    %cst_42 = arith.constant 5.000000e-01 : f32
    %122 = vector.broadcast %cst_42 : f32 to vector<1x128xf32>
    %123 = arith.addf %121, %122 : vector<1x128xf32>
    %124 = vector.extract_strided_slice %115 {offsets = [0, 128], sizes = [1, 128], strides = [1, 1]} : vector<1x512xf32> to vector<1x128xf32>
    %cst_43 = arith.constant 5.000000e-01 : f32
    %125 = vector.broadcast %cst_43 : f32 to vector<1x128xf32>
    %126 = arith.mulf %125, %124 : vector<1x128xf32>
    %127 = math.tanh %126 : vector<1x128xf32>
    %cst_44 = arith.constant 5.000000e-01 : f32
    %128 = vector.broadcast %cst_44 : f32 to vector<1x128xf32>
    %129 = arith.mulf %128, %127 : vector<1x128xf32>
    %cst_45 = arith.constant 5.000000e-01 : f32
    %130 = vector.broadcast %cst_45 : f32 to vector<1x128xf32>
    %131 = arith.addf %129, %130 : vector<1x128xf32>
    %132 = vector.extract_strided_slice %115 {offsets = [0, 256], sizes = [1, 128], strides = [1, 1]} : vector<1x512xf32> to vector<1x128xf32>
    %133 = math.tanh %132 : vector<1x128xf32>
    %134 = vector.extract_strided_slice %115 {offsets = [0, 384], sizes = [1, 128], strides = [1, 1]} : vector<1x512xf32> to vector<1x128xf32>
    %cst_46 = arith.constant 5.000000e-01 : f32
    %135 = vector.broadcast %cst_46 : f32 to vector<1x128xf32>
    %136 = arith.mulf %135, %134 : vector<1x128xf32>
    %137 = math.tanh %136 : vector<1x128xf32>
    %cst_47 = arith.constant 5.000000e-01 : f32
    %138 = vector.broadcast %cst_47 : f32 to vector<1x128xf32>
    %139 = arith.mulf %138, %137 : vector<1x128xf32>
    %cst_48 = arith.constant 5.000000e-01 : f32
    %140 = vector.broadcast %cst_48 : f32 to vector<1x128xf32>
    %141 = arith.addf %139, %140 : vector<1x128xf32>
    %142 = arith.mulf %131, %109 : vector<1x128xf32>
    %143 = arith.mulf %123, %133 : vector<1x128xf32>
    %144 = arith.addf %142, %143 : vector<1x128xf32>
    %145 = math.tanh %144 : vector<1x128xf32>
    %146 = arith.mulf %141, %145 : vector<1x128xf32>
    %147 = vector.extract_strided_slice %4 {offsets = [4, 0], sizes = [1, 512], strides = [1, 1]} : vector<8x512xf32> to vector<1x512xf32>
    %cst_49 = arith.constant dense<0.000000e+00> : vector<1x512xf32>
    %148 = tpu.matmul %146, %0, %cst_49 {dimension_numbers = #tpu.dot_dimension_numbers<[1], [0], [0], [1], [0, 0, 1, 1], [], []>} : vector<1x128xf32>, vector<128x512xf32>, vector<1x512xf32> -> vector<1x512xf32>
    %149 = arith.addf %147, %148 : vector<1x512xf32>
    %150 = arith.addf %149, %1 : vector<1x512xf32>
    %151 = vector.extract_strided_slice %150 {offsets = [0, 0], sizes = [1, 128], strides = [1, 1]} : vector<1x512xf32> to vector<1x128xf32>
    %cst_50 = arith.constant 5.000000e-01 : f32
    %152 = vector.broadcast %cst_50 : f32 to vector<1x128xf32>
    %153 = arith.mulf %152, %151 : vector<1x128xf32>
    %154 = math.tanh %153 : vector<1x128xf32>
    %cst_51 = arith.constant 5.000000e-01 : f32
    %155 = vector.broadcast %cst_51 : f32 to vector<1x128xf32>
    %156 = arith.mulf %155, %154 : vector<1x128xf32>
    %cst_52 = arith.constant 5.000000e-01 : f32
    %157 = vector.broadcast %cst_52 : f32 to vector<1x128xf32>
    %158 = arith.addf %156, %157 : vector<1x128xf32>
    %159 = vector.extract_strided_slice %150 {offsets = [0, 128], sizes = [1, 128], strides = [1, 1]} : vector<1x512xf32> to vector<1x128xf32>
    %cst_53 = arith.constant 5.000000e-01 : f32
    %160 = vector.broadcast %cst_53 : f32 to vector<1x128xf32>
    %161 = arith.mulf %160, %159 : vector<1x128xf32>
    %162 = math.tanh %161 : vector<1x128xf32>
    %cst_54 = arith.constant 5.000000e-01 : f32
    %163 = vector.broadcast %cst_54 : f32 to vector<1x128xf32>
    %164 = arith.mulf %163, %162 : vector<1x128xf32>
    %cst_55 = arith.constant 5.000000e-01 : f32
    %165 = vector.broadcast %cst_55 : f32 to vector<1x128xf32>
    %166 = arith.addf %164, %165 : vector<1x128xf32>
    %167 = vector.extract_strided_slice %150 {offsets = [0, 256], sizes = [1, 128], strides = [1, 1]} : vector<1x512xf32> to vector<1x128xf32>
    %168 = math.tanh %167 : vector<1x128xf32>
    %169 = vector.extract_strided_slice %150 {offsets = [0, 384], sizes = [1, 128], strides = [1, 1]} : vector<1x512xf32> to vector<1x128xf32>
    %cst_56 = arith.constant 5.000000e-01 : f32
    %170 = vector.broadcast %cst_56 : f32 to vector<1x128xf32>
    %171 = arith.mulf %170, %169 : vector<1x128xf32>
    %172 = math.tanh %171 : vector<1x128xf32>
    %cst_57 = arith.constant 5.000000e-01 : f32
    %173 = vector.broadcast %cst_57 : f32 to vector<1x128xf32>
    %174 = arith.mulf %173, %172 : vector<1x128xf32>
    %cst_58 = arith.constant 5.000000e-01 : f32
    %175 = vector.broadcast %cst_58 : f32 to vector<1x128xf32>
    %176 = arith.addf %174, %175 : vector<1x128xf32>
    %177 = arith.mulf %166, %144 : vector<1x128xf32>
    %178 = arith.mulf %158, %168 : vector<1x128xf32>
    %179 = arith.addf %177, %178 : vector<1x128xf32>
    %180 = math.tanh %179 : vector<1x128xf32>
    %181 = arith.mulf %176, %180 : vector<1x128xf32>
    %182 = vector.extract_strided_slice %4 {offsets = [5, 0], sizes = [1, 512], strides = [1, 1]} : vector<8x512xf32> to vector<1x512xf32>
    %cst_59 = arith.constant dense<0.000000e+00> : vector<1x512xf32>
    %183 = tpu.matmul %181, %0, %cst_59 {dimension_numbers = #tpu.dot_dimension_numbers<[1], [0], [0], [1], [0, 0, 1, 1], [], []>} : vector<1x128xf32>, vector<128x512xf32>, vector<1x512xf32> -> vector<1x512xf32>
    %184 = arith.addf %182, %183 : vector<1x512xf32>
    %185 = arith.addf %184, %1 : vector<1x512xf32>
    %186 = vector.extract_strided_slice %185 {offsets = [0, 0], sizes = [1, 128], strides = [1, 1]} : vector<1x512xf32> to vector<1x128xf32>
    %cst_60 = arith.constant 5.000000e-01 : f32
    %187 = vector.broadcast %cst_60 : f32 to vector<1x128xf32>
    %188 = arith.mulf %187, %186 : vector<1x128xf32>
    %189 = math.tanh %188 : vector<1x128xf32>
    %cst_61 = arith.constant 5.000000e-01 : f32
    %190 = vector.broadcast %cst_61 : f32 to vector<1x128xf32>
    %191 = arith.mulf %190, %189 : vector<1x128xf32>
    %cst_62 = arith.constant 5.000000e-01 : f32
    %192 = vector.broadcast %cst_62 : f32 to vector<1x128xf32>
    %193 = arith.addf %191, %192 : vector<1x128xf32>
    %194 = vector.extract_strided_slice %185 {offsets = [0, 128], sizes = [1, 128], strides = [1, 1]} : vector<1x512xf32> to vector<1x128xf32>
    %cst_63 = arith.constant 5.000000e-01 : f32
    %195 = vector.broadcast %cst_63 : f32 to vector<1x128xf32>
    %196 = arith.mulf %195, %194 : vector<1x128xf32>
    %197 = math.tanh %196 : vector<1x128xf32>
    %cst_64 = arith.constant 5.000000e-01 : f32
    %198 = vector.broadcast %cst_64 : f32 to vector<1x128xf32>
    %199 = arith.mulf %198, %197 : vector<1x128xf32>
    %cst_65 = arith.constant 5.000000e-01 : f32
    %200 = vector.broadcast %cst_65 : f32 to vector<1x128xf32>
    %201 = arith.addf %199, %200 : vector<1x128xf32>
    %202 = vector.extract_strided_slice %185 {offsets = [0, 256], sizes = [1, 128], strides = [1, 1]} : vector<1x512xf32> to vector<1x128xf32>
    %203 = math.tanh %202 : vector<1x128xf32>
    %204 = vector.extract_strided_slice %185 {offsets = [0, 384], sizes = [1, 128], strides = [1, 1]} : vector<1x512xf32> to vector<1x128xf32>
    %cst_66 = arith.constant 5.000000e-01 : f32
    %205 = vector.broadcast %cst_66 : f32 to vector<1x128xf32>
    %206 = arith.mulf %205, %204 : vector<1x128xf32>
    %207 = math.tanh %206 : vector<1x128xf32>
    %cst_67 = arith.constant 5.000000e-01 : f32
    %208 = vector.broadcast %cst_67 : f32 to vector<1x128xf32>
    %209 = arith.mulf %208, %207 : vector<1x128xf32>
    %cst_68 = arith.constant 5.000000e-01 : f32
    %210 = vector.broadcast %cst_68 : f32 to vector<1x128xf32>
    %211 = arith.addf %209, %210 : vector<1x128xf32>
    %212 = arith.mulf %201, %179 : vector<1x128xf32>
    %213 = arith.mulf %193, %203 : vector<1x128xf32>
    %214 = arith.addf %212, %213 : vector<1x128xf32>
    %215 = math.tanh %214 : vector<1x128xf32>
    %216 = arith.mulf %211, %215 : vector<1x128xf32>
    %217 = vector.extract_strided_slice %4 {offsets = [6, 0], sizes = [1, 512], strides = [1, 1]} : vector<8x512xf32> to vector<1x512xf32>
    %cst_69 = arith.constant dense<0.000000e+00> : vector<1x512xf32>
    %218 = tpu.matmul %216, %0, %cst_69 {dimension_numbers = #tpu.dot_dimension_numbers<[1], [0], [0], [1], [0, 0, 1, 1], [], []>} : vector<1x128xf32>, vector<128x512xf32>, vector<1x512xf32> -> vector<1x512xf32>
    %219 = arith.addf %217, %218 : vector<1x512xf32>
    %220 = arith.addf %219, %1 : vector<1x512xf32>
    %221 = vector.extract_strided_slice %220 {offsets = [0, 0], sizes = [1, 128], strides = [1, 1]} : vector<1x512xf32> to vector<1x128xf32>
    %cst_70 = arith.constant 5.000000e-01 : f32
    %222 = vector.broadcast %cst_70 : f32 to vector<1x128xf32>
    %223 = arith.mulf %222, %221 : vector<1x128xf32>
    %224 = math.tanh %223 : vector<1x128xf32>
    %cst_71 = arith.constant 5.000000e-01 : f32
    %225 = vector.broadcast %cst_71 : f32 to vector<1x128xf32>
    %226 = arith.mulf %225, %224 : vector<1x128xf32>
    %cst_72 = arith.constant 5.000000e-01 : f32
    %227 = vector.broadcast %cst_72 : f32 to vector<1x128xf32>
    %228 = arith.addf %226, %227 : vector<1x128xf32>
    %229 = vector.extract_strided_slice %220 {offsets = [0, 128], sizes = [1, 128], strides = [1, 1]} : vector<1x512xf32> to vector<1x128xf32>
    %cst_73 = arith.constant 5.000000e-01 : f32
    %230 = vector.broadcast %cst_73 : f32 to vector<1x128xf32>
    %231 = arith.mulf %230, %229 : vector<1x128xf32>
    %232 = math.tanh %231 : vector<1x128xf32>
    %cst_74 = arith.constant 5.000000e-01 : f32
    %233 = vector.broadcast %cst_74 : f32 to vector<1x128xf32>
    %234 = arith.mulf %233, %232 : vector<1x128xf32>
    %cst_75 = arith.constant 5.000000e-01 : f32
    %235 = vector.broadcast %cst_75 : f32 to vector<1x128xf32>
    %236 = arith.addf %234, %235 : vector<1x128xf32>
    %237 = vector.extract_strided_slice %220 {offsets = [0, 256], sizes = [1, 128], strides = [1, 1]} : vector<1x512xf32> to vector<1x128xf32>
    %238 = math.tanh %237 : vector<1x128xf32>
    %239 = vector.extract_strided_slice %220 {offsets = [0, 384], sizes = [1, 128], strides = [1, 1]} : vector<1x512xf32> to vector<1x128xf32>
    %cst_76 = arith.constant 5.000000e-01 : f32
    %240 = vector.broadcast %cst_76 : f32 to vector<1x128xf32>
    %241 = arith.mulf %240, %239 : vector<1x128xf32>
    %242 = math.tanh %241 : vector<1x128xf32>
    %cst_77 = arith.constant 5.000000e-01 : f32
    %243 = vector.broadcast %cst_77 : f32 to vector<1x128xf32>
    %244 = arith.mulf %243, %242 : vector<1x128xf32>
    %cst_78 = arith.constant 5.000000e-01 : f32
    %245 = vector.broadcast %cst_78 : f32 to vector<1x128xf32>
    %246 = arith.addf %244, %245 : vector<1x128xf32>
    %247 = arith.mulf %236, %214 : vector<1x128xf32>
    %248 = arith.mulf %228, %238 : vector<1x128xf32>
    %249 = arith.addf %247, %248 : vector<1x128xf32>
    %250 = math.tanh %249 : vector<1x128xf32>
    %251 = arith.mulf %246, %250 : vector<1x128xf32>
    %252 = vector.extract_strided_slice %4 {offsets = [7, 0], sizes = [1, 512], strides = [1, 1]} : vector<8x512xf32> to vector<1x512xf32>
    %cst_79 = arith.constant dense<0.000000e+00> : vector<1x512xf32>
    %253 = tpu.matmul %251, %0, %cst_79 {dimension_numbers = #tpu.dot_dimension_numbers<[1], [0], [0], [1], [0, 0, 1, 1], [], []>} : vector<1x128xf32>, vector<128x512xf32>, vector<1x512xf32> -> vector<1x512xf32>
    %254 = arith.addf %252, %253 : vector<1x512xf32>
    %255 = arith.addf %254, %1 : vector<1x512xf32>
    %256 = vector.extract_strided_slice %255 {offsets = [0, 0], sizes = [1, 128], strides = [1, 1]} : vector<1x512xf32> to vector<1x128xf32>
    %cst_80 = arith.constant 5.000000e-01 : f32
    %257 = vector.broadcast %cst_80 : f32 to vector<1x128xf32>
    %258 = arith.mulf %257, %256 : vector<1x128xf32>
    %259 = math.tanh %258 : vector<1x128xf32>
    %cst_81 = arith.constant 5.000000e-01 : f32
    %260 = vector.broadcast %cst_81 : f32 to vector<1x128xf32>
    %261 = arith.mulf %260, %259 : vector<1x128xf32>
    %cst_82 = arith.constant 5.000000e-01 : f32
    %262 = vector.broadcast %cst_82 : f32 to vector<1x128xf32>
    %263 = arith.addf %261, %262 : vector<1x128xf32>
    %264 = vector.extract_strided_slice %255 {offsets = [0, 128], sizes = [1, 128], strides = [1, 1]} : vector<1x512xf32> to vector<1x128xf32>
    %cst_83 = arith.constant 5.000000e-01 : f32
    %265 = vector.broadcast %cst_83 : f32 to vector<1x128xf32>
    %266 = arith.mulf %265, %264 : vector<1x128xf32>
    %267 = math.tanh %266 : vector<1x128xf32>
    %cst_84 = arith.constant 5.000000e-01 : f32
    %268 = vector.broadcast %cst_84 : f32 to vector<1x128xf32>
    %269 = arith.mulf %268, %267 : vector<1x128xf32>
    %cst_85 = arith.constant 5.000000e-01 : f32
    %270 = vector.broadcast %cst_85 : f32 to vector<1x128xf32>
    %271 = arith.addf %269, %270 : vector<1x128xf32>
    %272 = vector.extract_strided_slice %255 {offsets = [0, 256], sizes = [1, 128], strides = [1, 1]} : vector<1x512xf32> to vector<1x128xf32>
    %273 = math.tanh %272 : vector<1x128xf32>
    %274 = vector.extract_strided_slice %255 {offsets = [0, 384], sizes = [1, 128], strides = [1, 1]} : vector<1x512xf32> to vector<1x128xf32>
    %cst_86 = arith.constant 5.000000e-01 : f32
    %275 = vector.broadcast %cst_86 : f32 to vector<1x128xf32>
    %276 = arith.mulf %275, %274 : vector<1x128xf32>
    %277 = math.tanh %276 : vector<1x128xf32>
    %cst_87 = arith.constant 5.000000e-01 : f32
    %278 = vector.broadcast %cst_87 : f32 to vector<1x128xf32>
    %279 = arith.mulf %278, %277 : vector<1x128xf32>
    %cst_88 = arith.constant 5.000000e-01 : f32
    %280 = vector.broadcast %cst_88 : f32 to vector<1x128xf32>
    %281 = arith.addf %279, %280 : vector<1x128xf32>
    %282 = arith.mulf %271, %249 : vector<1x128xf32>
    %283 = arith.mulf %263, %273 : vector<1x128xf32>
    %284 = arith.addf %282, %283 : vector<1x128xf32>
    %285 = math.tanh %284 : vector<1x128xf32>
    %286 = arith.mulf %281, %285 : vector<1x128xf32>
    %287 = math.tanh %286 : vector<1x128xf32>
    %c0_89 = arith.constant 0 : index
    %c0_90 = arith.constant 0 : index
    %288 = vector.load %arg4[%c0_89, %c0_90] : memref<128x512xf32, #tpu.memory_space<vmem>>, vector<128x512xf32>
    %cst_91 = arith.constant dense<0.000000e+00> : vector<1x512xf32>
    %289 = tpu.matmul %287, %288, %cst_91 {dimension_numbers = #tpu.dot_dimension_numbers<[1], [0], [0], [1], [0, 0, 1, 1], [], []>} : vector<1x128xf32>, vector<128x512xf32>, vector<1x512xf32> -> vector<1x512xf32>
    %c0_92 = arith.constant 0 : index
    %c0_93 = arith.constant 0 : index
    %290 = vector.load %arg5[%c0_92, %c0_93] : memref<1x512xf32, #tpu.memory_space<vmem>>, vector<1x512xf32>
    %291 = arith.addf %289, %290 : vector<1x512xf32>
    %292 = vector.extract_strided_slice %291 {offsets = [0, 0], sizes = [1, 128], strides = [1, 1]} : vector<1x512xf32> to vector<1x128xf32>
    %cst_94 = arith.constant 5.000000e-01 : f32
    %293 = vector.broadcast %cst_94 : f32 to vector<1x128xf32>
    %294 = arith.mulf %293, %292 : vector<1x128xf32>
    %295 = math.tanh %294 : vector<1x128xf32>
    %cst_95 = arith.constant 5.000000e-01 : f32
    %296 = vector.broadcast %cst_95 : f32 to vector<1x128xf32>
    %297 = arith.mulf %296, %295 : vector<1x128xf32>
    %cst_96 = arith.constant 5.000000e-01 : f32
    %298 = vector.broadcast %cst_96 : f32 to vector<1x128xf32>
    %299 = arith.addf %297, %298 : vector<1x128xf32>
    %300 = vector.extract_strided_slice %291 {offsets = [0, 256], sizes = [1, 128], strides = [1, 1]} : vector<1x512xf32> to vector<1x128xf32>
    %301 = math.tanh %300 : vector<1x128xf32>
    %302 = vector.extract_strided_slice %291 {offsets = [0, 384], sizes = [1, 128], strides = [1, 1]} : vector<1x512xf32> to vector<1x128xf32>
    %cst_97 = arith.constant 5.000000e-01 : f32
    %303 = vector.broadcast %cst_97 : f32 to vector<1x128xf32>
    %304 = arith.mulf %303, %302 : vector<1x128xf32>
    %305 = math.tanh %304 : vector<1x128xf32>
    %cst_98 = arith.constant 5.000000e-01 : f32
    %306 = vector.broadcast %cst_98 : f32 to vector<1x128xf32>
    %307 = arith.mulf %306, %305 : vector<1x128xf32>
    %cst_99 = arith.constant 5.000000e-01 : f32
    %308 = vector.broadcast %cst_99 : f32 to vector<1x128xf32>
    %309 = arith.addf %307, %308 : vector<1x128xf32>
    %310 = arith.mulf %299, %301 : vector<1x128xf32>
    %311 = math.tanh %310 : vector<1x128xf32>
    %312 = arith.mulf %309, %311 : vector<1x128xf32>
    %313 = math.tanh %312 : vector<1x128xf32>
    %c0_100 = arith.constant 0 : index
    %c0_101 = arith.constant 0 : index
    %314 = vector.load %arg6[%c0_100, %c0_101] : memref<128x512xf32, #tpu.memory_space<vmem>>, vector<128x512xf32>
    %cst_102 = arith.constant dense<0.000000e+00> : vector<1x512xf32>
    %315 = tpu.matmul %313, %314, %cst_102 {dimension_numbers = #tpu.dot_dimension_numbers<[1], [0], [0], [1], [0, 0, 1, 1], [], []>} : vector<1x128xf32>, vector<128x512xf32>, vector<1x512xf32> -> vector<1x512xf32>
    %c0_103 = arith.constant 0 : index
    %c0_104 = arith.constant 0 : index
    %316 = vector.load %arg7[%c0_103, %c0_104] : memref<1x512xf32, #tpu.memory_space<vmem>>, vector<1x512xf32>
    %317 = arith.addf %315, %316 : vector<1x512xf32>
    %318 = vector.extract_strided_slice %317 {offsets = [0, 0], sizes = [1, 128], strides = [1, 1]} : vector<1x512xf32> to vector<1x128xf32>
    %cst_105 = arith.constant 5.000000e-01 : f32
    %319 = vector.broadcast %cst_105 : f32 to vector<1x128xf32>
    %320 = arith.mulf %319, %318 : vector<1x128xf32>
    %321 = math.tanh %320 : vector<1x128xf32>
    %cst_106 = arith.constant 5.000000e-01 : f32
    %322 = vector.broadcast %cst_106 : f32 to vector<1x128xf32>
    %323 = arith.mulf %322, %321 : vector<1x128xf32>
    %cst_107 = arith.constant 5.000000e-01 : f32
    %324 = vector.broadcast %cst_107 : f32 to vector<1x128xf32>
    %325 = arith.addf %323, %324 : vector<1x128xf32>
    %326 = vector.extract_strided_slice %317 {offsets = [0, 256], sizes = [1, 128], strides = [1, 1]} : vector<1x512xf32> to vector<1x128xf32>
    %327 = math.tanh %326 : vector<1x128xf32>
    %328 = vector.extract_strided_slice %317 {offsets = [0, 384], sizes = [1, 128], strides = [1, 1]} : vector<1x512xf32> to vector<1x128xf32>
    %cst_108 = arith.constant 5.000000e-01 : f32
    %329 = vector.broadcast %cst_108 : f32 to vector<1x128xf32>
    %330 = arith.mulf %329, %328 : vector<1x128xf32>
    %331 = math.tanh %330 : vector<1x128xf32>
    %cst_109 = arith.constant 5.000000e-01 : f32
    %332 = vector.broadcast %cst_109 : f32 to vector<1x128xf32>
    %333 = arith.mulf %332, %331 : vector<1x128xf32>
    %cst_110 = arith.constant 5.000000e-01 : f32
    %334 = vector.broadcast %cst_110 : f32 to vector<1x128xf32>
    %335 = arith.addf %333, %334 : vector<1x128xf32>
    %336 = arith.mulf %325, %327 : vector<1x128xf32>
    %337 = math.tanh %336 : vector<1x128xf32>
    %338 = arith.mulf %335, %337 : vector<1x128xf32>
    %c0_111 = arith.constant 0 : index
    %c0_112 = arith.constant 0 : index
    %339 = vector.load %arg8[%c0_111, %c0_112] : memref<1x128xf32, #tpu.memory_space<vmem>>, vector<1x128xf32>
    %340 = arith.mulf %338, %339 : vector<1x128xf32>
    %cst_113 = arith.constant dense<0.000000e+00> : vector<1xf32>
    %341 = vector.multi_reduction <add>, %340, %cst_113 [1] : vector<1x128xf32> to vector<1xf32>
    %342 = vector.shape_cast %341 : vector<1xf32> to vector<1x1xf32>
    %c0_114 = arith.constant 0 : index
    %c0_115 = arith.constant 0 : index
    %343 = vector.load %arg9[%c0_114, %c0_115] : memref<1x1xf32, #tpu.memory_space<vmem>>, vector<1x1xf32>
    %344 = arith.addf %342, %343 : vector<1x1xf32>
    %cst_116 = arith.constant 5.000000e-01 : f32
    %345 = vector.broadcast %cst_116 : f32 to vector<1x1xf32>
    %346 = arith.mulf %345, %344 : vector<1x1xf32>
    %347 = math.tanh %346 : vector<1x1xf32>
    %cst_117 = arith.constant 5.000000e-01 : f32
    %348 = vector.broadcast %cst_117 : f32 to vector<1x1xf32>
    %349 = arith.mulf %348, %347 : vector<1x1xf32>
    %cst_118 = arith.constant 5.000000e-01 : f32
    %350 = vector.broadcast %cst_118 : f32 to vector<1x1xf32>
    %351 = arith.addf %349, %350 : vector<1x1xf32>
    %c0_119 = arith.constant 0 : index
    %c0_120 = arith.constant 0 : index
    %352 = vector.load %arg10[%c0_119, %c0_120] : memref<1x1xf32, #tpu.memory_space<vmem>>, vector<1x1xf32>
    tpu.vector_store %arg10[%c0_119, %c0_120], %351 {strides = array<i32>} : memref<1x1xf32, #tpu.memory_space<vmem>>, vector<1x1xf32>,
    return
  }
}

</mosaic_0001>

<bundles_post_ra>
// kernel: manual_model_forward.1
= control target key start
LH: loop header
LB: loop body
LE: loop exit
PB: predicated region body
PF: predicated region fallthrough
CT: control target
= control target key end

     0   :  { %s4172_s0 = inlined_call_operand.vmem [shape: f32[8,3], index: 0, kind: input, shape index: {}]   ;;  %s4173_s1 = inlined_call_operand.vmem [shape: f32[3,512], index: 1, kind: input, shape index: {}]   ;;  %s4174_s2 = inlined_call_operand.vmem [shape: f32[128,512], index: 2, kind: input, shape index: {}]   ;;  %s4175_s3 = inlined_call_operand.vmem [shape: f32[1,512], index: 3, kind: input, shape index: {}]   ;;  %s4176_s4 = inlined_call_operand.vmem [shape: f32[128,512], index: 4, kind: input, shape index: {}]   ;;  %s4177_s5 = inlined_call_operand.vmem [shape: f32[1,512], index: 5, kind: input, shape index: {}]   ;;  %s4178_s6 = inlined_call_operand.vmem [shape: f32[128,512], index: 6, kind: input, shape index: {}]   ;;  %s4179_s7 = inlined_call_operand.vmem [shape: f32[1,512], index: 7, kind: input, shape index: {}]   ;;  %s4180_s8 = inlined_call_operand.vmem [shape: f32[1,128], index: 8, kind: input, shape index: {}]   ;;  %s4181_s9 = inlined_call_operand.<no memory space> [shape: f32[1,1], index: 9, kind: input, shape index: {}]   ;;  %s4182_s10 = inlined_call_operand.hbm [shape: f32[1,1], index: 10, kind: output, shape index: {}]  }
   0x1   :  { %v15_v0 = vstv %s4181_s9 }
   0x2   :  { %16 = vst [vmem:[#allocation2] sm:$0x1] %v15_v0 }
   0x3   :  { %v104_v1 = vld [vmem:[%s4173_s1] sm:$0x77]  ;;  %vm114_vm0 = vcmask 1042432   ;;  %v105_v2 = vld [vmem:[%s4173_s1 + $0x8] sm:$0x77]  ;;  %v3030_v5 = vmov 0.0  }
   0x4   :  { %v108_v3 = vcombine.high %v104_v1, %v104_v1  ;;  %v109_v4 = vcombine.high %v105_v2, %v105_v2  ;;  %187 = vmatprep.mubr.f32.mxu0 %v3030_v5  ;;  %v103_v6 = vld [vmem:[%s4172_s0] sm:$0xff]  ;;  %258 = vmatprep.mubr.f32.mxu1 %v3030_v5  ;;  %v39_v7 = vld [vmem:[%s4174_s2 + $0x8] sm:$0xff]  ;;  %vm110_vm1 = vcmask 23552   ;;  %v41_v10 = vld [vmem:[%s4174_s2 + $0x18] sm:$0xff] }
   0x5   :  { %v43_v8 = vld [vmem:[%s4174_s2 + $0x28] sm:$0xff]  ;;  %v45_v11 = vld [vmem:[%s4174_s2 + $0x38] sm:$0xff]  ;;  %v38_v12 = vld [vmem:[%s4174_s2] sm:$0xff] }
   0x6   :  { %v3107_v9 = vpack.c.bf16 %v43_v8, %v39_v7  ;;  %2254 = vmatprep.subr.msk.mxu0 %vm114_vm0, %v108_v3  ;;  %2257 = vmatprep.subr.msk.mxu1 %vm114_vm0, %v109_v4  ;;  %v3120_v13 = vpack.c.bf16 %v45_v11, %v41_v10  ;;  %v42_v14 = vld [vmem:[%s4174_s2 + $0x20] sm:$0xff]  ;;  %v40_v15 = vld [vmem:[%s4174_s2 + $0x10] sm:$0xff]  ;;  %v47_v19 = vld [vmem:[%s4174_s2 + $0x48] sm:$0xff] }
   0x7   :  { %v44_v16 = vld [vmem:[%s4174_s2 + $0x30] sm:$0xff]  ;;  %2255 = vmatpush1.msk.msra.mxu0 %vm114_vm0, %v104_v1  ;;  %2258 = vmatpush1.msk.msra.mxu1 %vm114_vm0, %v105_v2  ;;  %v3133_v17 = vpack.c.bf16 %v42_v14, %v38_v12  ;;  %v51_v20 = vld [vmem:[%s4174_s2 + $0x68] sm:$0xff]  ;;  %v49_v21 = vld [vmem:[%s4174_s2 + $0x58] sm:$0xff] }
   0x8   :  { %v3135_v18 = vpack.c.bf16 %v44_v16, %v40_v15  ;;  %2256 = vmatmul.mubr.msk.f32.vlgmr.msra.gmra.mrb[0].mxu0 %vm110_vm1, %v103_v6  ;;  %2261 = vmatprep.subr.bf16.mxu0 %v3107_v9  ;;  %v3148_v22 = vpack.c.bf16 %v51_v20, %v47_v19  ;;  %v53_v23 = vld [vmem:[%s4174_s2 + $0x78] sm:$0xff]  ;;  %v46_v24 = vld [vmem:[%s4174_s2 + $0x40] sm:$0xff]  ;;  %v48_v27 = vld [vmem:[%s4174_s2 + $0x50] sm:$0xff] }
   0x9   :  { %v50_v25 = vld [vmem:[%s4174_s2 + $0x60] sm:$0xff]  ;;  %2293 = vmatprep.subr.bf16.mxu1 %v3120_v13  ;;  %2259 = vmatmul.mubr.msk.f32.vlgmr.msra.gmra.mrb[0].mxu1 %vm110_vm1, %v103_v6  ;;  %v3161_v26 = vpack.c.bf16 %v53_v23, %v49_v21  ;;  %v52_v28 = vld [vmem:[%s4174_s2 + $0x70] sm:$0xff]  ;;  %v55_v29 = vld [vmem:[%s4174_s2 + $0x88] sm:$0xff] }
   0xa   :  { %2263 = vmatpush1.bf16.msra.mxu0 %v3133_v17  ;;  %2295 = vmatpush1.bf16.msra.mxu1 %v3135_v18  ;;  %v3174_v30 = vpack.c.bf16 %v50_v25, %v46_v24  ;;  %v3176_v31 = vpack.c.bf16 %v52_v28, %v48_v27  ;;  %v59_v32 = vld [vmem:[%s4174_s2 + $0xa8] sm:$0xff]  ;;  %v57_v33 = vld [vmem:[%s4174_s2 + $0x98] sm:$0xff]  ;;  %v54_v37 = vld [vmem:[%s4174_s2 + $0x80] sm:$0xff] }
   0xb   :  { %v61_v34 = vld [vmem:[%s4174_s2 + $0xb8] sm:$0xff]  ;;  %2265 = vmatprep.subr.bf16.mxu0 %v3148_v22  ;;  %2297 = vmatprep.subr.bf16.mxu1 %v3161_v26  ;;  %v3189_v35 = vpack.c.bf16 %v59_v32, %v55_v29  ;;  %v58_v38 = vld [vmem:[%s4174_s2 + $0xa0] sm:$0xff]  ;;  %v56_v39 = vld [vmem:[%s4174_s2 + $0x90] sm:$0xff] }
   0xc   :  { %v3191_v36 = vpack.c.bf16 %v61_v34, %v57_v33  ;;  %v60_v40 = vld [vmem:[%s4174_s2 + $0xb0] sm:$0xff]  ;;  %v63_v41 = vld [vmem:[%s4174_s2 + $0xc8] sm:$0xff]  ;;  %329 = vmatprep.mubr.f32.mxu0 %v3030_v5  ;;  %400 = vmatprep.mubr.f32.mxu1 %v3030_v5  ;;  %v65_v43 = vld [vmem:[%s4174_s2 + $0xd8] sm:$0xff]  ;;  %v3221_v45 = vpack.c.bf16 %v58_v38, %v54_v37 }
   0xd   :  { %v67_v42 = vld [vmem:[%s4174_s2 + $0xe8] sm:$0xff]  ;;  %v69_v44 = vld [vmem:[%s4174_s2 + $0xf8] sm:$0xff]  ;;  %v3223_v46 = vpack.c.bf16 %v60_v40, %v56_v39  ;;  %v62_v47 = vld [vmem:[%s4174_s2 + $0xc0] sm:$0xff] }
   0xe   :  { %2267 = vmatpush1.bf16.msra.mxu0 %v3174_v30  ;;  %2299 = vmatpush1.bf16.msra.mxu1 %v3176_v31  ;;  %v66_v48 = vld [vmem:[%s4174_s2 + $0xe0] sm:$0xff]  ;;  %v3233_v49 = vpack.c.bf16 %v67_v42, %v63_v41  ;;  %v3235_v50 = vpack.c.bf16 %v69_v44, %v65_v43  ;;  %v64_v51 = vld [vmem:[%s4174_s2 + $0xd0] sm:$0xff]  ;;  %v71_v53 = vld [vmem:[%s4174_s2 + $0x108] sm:$0xff] }
   0xf   :  { %2269 = vmatprep.subr.bf16.mxu0 %v3189_v35  ;;  %2301 = vmatprep.subr.bf16.mxu1 %v3191_v36  ;;  %v68_v52 = vld [vmem:[%s4174_s2 + $0xf0] sm:$0xff]  ;;  %v75_v54 = vld [vmem:[%s4174_s2 + $0x128] sm:$0xff]  ;;  %v73_v55 = vld [vmem:[%s4174_s2 + $0x118] sm:$0xff]  ;;  %v3257_v57 = vpack.c.bf16 %v66_v48, %v62_v47 }
  0x10   :  { %v77_v56 = vld [vmem:[%s4174_s2 + $0x138] sm:$0xff]  ;;  %v3259_v58 = vpack.c.bf16 %v68_v52, %v64_v51  ;;  %v70_v59 = vld [vmem:[%s4174_s2 + $0x100] sm:$0xff]  ;;  %v3269_v61 = vpack.c.bf16 %v75_v54, %v71_v53  ;;  %v72_v63 = vld [vmem:[%s4174_s2 + $0x110] sm:$0xff] }
  0x11   :  { %v74_v60 = vld [vmem:[%s4174_s2 + $0x120] sm:$0xff]  ;;  %v3271_v62 = vpack.c.bf16 %v77_v56, %v73_v55  ;;  %v76_v0 = vld [vmem:[%s4174_s2 + $0x130] sm:$0xff]  ;;  %v79_v1 = vld [vmem:[%s4174_s2 + $0x148] sm:$0xff] }
  0x12   :  { %2271 = vmatpush1.bf16.msra.mxu0 %v3221_v45  ;;  %2303 = vmatpush1.bf16.msra.mxu1 %v3223_v46  ;;  %v83_v2 = vld [vmem:[%s4174_s2 + $0x168] sm:$0xff]  ;;  %v81_v3 = vld [vmem:[%s4174_s2 + $0x158] sm:$0xff]  ;;  %v3293_v6 = vpack.c.bf16 %v74_v60, %v70_v59  ;;  %v3295_v7 = vpack.c.bf16 %v76_v0, %v72_v63  ;;  %v78_v8 = vld [vmem:[%s4174_s2 + $0x140] sm:$0xff] }
  0x13   :  { %2273 = vmatprep.subr.bf16.mxu0 %v3233_v49  ;;  %2305 = vmatprep.subr.bf16.mxu1 %v3235_v50  ;;  %v85_v4 = vld [vmem:[%s4174_s2 + $0x178] sm:$0xff]  ;;  %v82_v10 = vld [vmem:[%s4174_s2 + $0x160] sm:$0xff]  ;;  %v3305_v11 = vpack.c.bf16 %v83_v2, %v79_v1  ;;  %v80_v14 = vld [vmem:[%s4174_s2 + $0x150] sm:$0xff] }
  0x14   :  { %v3307_v12 = vpack.c.bf16 %v85_v4, %v81_v3  ;;  %v84_v15 = vld [vmem:[%s4174_s2 + $0x170] sm:$0xff]  ;;  %v87_v16 = vld [vmem:[%s4174_s2 + $0x188] sm:$0xff]  ;;  %v89_v20 = vld [vmem:[%s4174_s2 + $0x198] sm:$0xff] }
  0x15   :  { %v91_v19 = vld [vmem:[%s4174_s2 + $0x1a8] sm:$0xff]  ;;  %v93_v21 = vld [vmem:[%s4174_s2 + $0x1b8] sm:$0xff] }
  0x16   :  { %2275 = vmatpush1.bf16.msra.mxu0 %v3257_v57  ;;  %2307 = vmatpush1.bf16.msra.mxu1 %v3259_v58 }
  0x17   :  { %2277 = vmatprep.subr.bf16.mxu0 %v3269_v61  ;;  %2309 = vmatprep.subr.bf16.mxu1 %v3271_v62 }
  0x18   :  { %17 = vsyncpa [#allocation4], 0  ;;  %v3329_v23 = vpack.c.bf16 %v82_v10, %v78_v8  ;;  %v3331_v24 = vpack.c.bf16 %v84_v15, %v80_v14  ;;  %v86_v25 = vld [vmem:[%s4174_s2 + $0x180] sm:$0xff]  ;;  %v3341_v28 = vpack.c.bf16 %v91_v19, %v87_v16  ;;  %v3343_v29 = vpack.c.bf16 %v93_v21, %v89_v20  ;;  %v88_v32 = vld [vmem:[%s4174_s2 + $0x190] sm:$0xff]  ;;  %s3031_s14 = smov [#allocation3]  }
  0x19   :  { %v90_v27 = vld [vmem:[%s4174_s2 + $0x1a0] sm:$0xff]  ;;  %v92_v33 = vld [vmem:[%s4174_s2 + $0x1b0] sm:$0xff]  ;;  %v95_v34 = vld [vmem:[%s4174_s2 + $0x1c8] sm:$0xff]  ;;  %v412_v60 = vlaneseq  ;;  %vm2228_vm2 = vcmask 1040384   ;;  %s2246_s15 = sshll.u32 %s3031_s14, 4  ;;  %vm2238_vm3 = vcmask 0   ;;  %s2247_s15 = int_to_ptr.vmem [resolvable:$true] %s2246_s15 }
  0x1a   :  { %2279 = vmatpush1.bf16.msra.mxu0 %v3293_v6  ;;  %2311 = vmatpush1.bf16.msra.mxu1 %v3295_v7  ;;  %v99_v37 = vld [vmem:[%s4174_s2 + $0x1e8] sm:$0xff]  ;;  %v97_v38 = vld [vmem:[%s4174_s2 + $0x1d8] sm:$0xff]  ;;  %v3365_v40 = vpack.c.bf16 %v90_v27, %v86_v25  ;;  %v3367_v41 = vpack.c.bf16 %v92_v33, %v88_v32  ;;  %v94_v42 = vld [vmem:[%s4174_s2 + $0x1c0] sm:$0xff]  ;;  %s3006_s16 = scalar_lea.vmem %s2247_s15, 16  ;;  %p3011_p1 = scmp.lt.s32.totalorder %s2247_s15, %s2247_s15 }
  0x1b   :  { %2281 = vmatprep.subr.bf16.mxu0 %v3305_v11  ;;  %2313 = vmatprep.subr.bf16.mxu1 %v3307_v12  ;;  %v101_v39 = vld [vmem:[%s4174_s2 + $0x1f8] sm:$0xff]  ;;  %v3374_v43 = vpack.c.bf16 %v99_v37, %v95_v34  ;;  %v98_v47 = vld [vmem:[%s4174_s2 + $0x1e0] sm:$0xff]  ;;  %v96_v48 = vld [vmem:[%s4174_s2 + $0x1d0] sm:$0xff]  ;;  %v413_v63 = vshrl.u32 %v412_v60, 7  ;;  %p3007_p0 = scmp.ne.s32.totalorder %s2247_s15, %s3006_s16 }
  0x1c   :  { %v3376_v44 = vpack.c.bf16 %v101_v39, %v97_v38  ;;  %v100_v51 = vld [vmem:[%s4174_s2 + $0x1f0] sm:$0xff]  ;;  %v3389_v52 = vpack.c.bf16 %v98_v47, %v94_v42  ;;  %v102_v1 = vld [vmem:[%s4175_s3] sm:$0xf] }
  0x1d   :  { %v3391_v53 = vpack.c.bf16 %v100_v51, %v96_v48  ;;  %v3443_v0 = vsub.s32 0, %v413_v63  ;;  %v418_v2 = vsub.s32 1, %v413_v63  ;;  %v3451_v4 = vsub.s32 2, %v413_v63 }
  0x1e   :  { %2283 = vmatpush1.bf16.msra.mxu0 %v3329_v23  ;;  %2315 = vmatpush1.bf16.msra.mxu1 %v3331_v24  ;;  %v3463_v33 = vsub.s32 3, %v413_v63 }
  0x1f   :  { %2285 = vmatprep.subr.bf16.mxu0 %v3341_v28  ;;  %2317 = vmatprep.subr.bf16.mxu1 %v3343_v29  ;;  %v3449_v3 = vrot.slane %v102_v1, %v3443_v0  ;;  %v3453_v14 = vrot.slane %v102_v1, %v418_v2  ;;  %v3461_v32 = vrot.slane %v102_v1, %v3451_v4 }
  0x20   :  { %v3468_v42 = vrot.slane %v102_v1, %v3463_v33 }
  0x22   :  { %2287 = vmatpush1.bf16.msra.mxu0 %v3365_v40  ;;  %2319 = vmatpush1.bf16.msra.mxu1 %v3367_v41 }
  0x23   :  { %2289 = vmatprep.subr.bf16.mxu0 %v3374_v43  ;;  %2321 = vmatprep.subr.bf16.mxu1 %v3376_v44 }
  0x26   :  { %2291 = vmatpush1.bf16.msra.mxu0 %v3389_v52  ;;  %2323 = vmatpush1.bf16.msra.mxu1 %v3391_v53 }
  0x27   :  { %2325 = vmatprep.subr.bf16.mxu0 %v3107_v9  ;;  %2357 = vmatprep.subr.bf16.mxu1 %v3120_v13 }
  0x29   :  { %330 = vmatmul.mubr.f32.vlgmr.msra.gmra.mrb[2].mxu0 %v3030_v5  ;;  %401 = vmatmul.mubr.f32.vlgmr.msra.gmra.mrb[2].mxu1 %v3030_v5 }
  0x2a   :  { %2327 = vmatpush1.bf16.msra.mxu0 %v3133_v17  ;;  %2359 = vmatpush1.bf16.msra.mxu1 %v3135_v18 }
  0x2b   :  { %2329 = vmatprep.subr.bf16.mxu0 %v3148_v22  ;;  %2361 = vmatprep.subr.bf16.mxu1 %v3161_v26 }
  0x2c   :  { %518 = vmatprep.mubr.f32.mxu0 %v3030_v5  ;;  %589 = vmatprep.mubr.f32.mxu1 %v3030_v5 }
  0x2e   :  { %2331 = vmatpush1.bf16.msra.mxu0 %v3174_v30  ;;  %2363 = vmatpush1.bf16.msra.mxu1 %v3176_v31 }
  0x2f   :  { %2333 = vmatprep.subr.bf16.mxu0 %v3189_v35  ;;  %2365 = vmatprep.subr.bf16.mxu1 %v3191_v36 }
  0x32   :  { %2335 = vmatpush1.bf16.msra.mxu0 %v3221_v45  ;;  %2367 = vmatpush1.bf16.msra.mxu1 %v3223_v46 }
  0x33   :  { %2337 = vmatprep.subr.bf16.mxu0 %v3233_v49  ;;  %2369 = vmatprep.subr.bf16.mxu1 %v3235_v50 }
  0x36   :  { %2339 = vmatpush1.bf16.msra.mxu0 %v3257_v57  ;;  %2371 = vmatpush1.bf16.msra.mxu1 %v3259_v58 }
  0x37   :  { %2341 = vmatprep.subr.bf16.mxu0 %v3269_v61  ;;  %2373 = vmatprep.subr.bf16.mxu1 %v3271_v62 }
  0x3a   :  { %2343 = vmatpush1.bf16.msra.mxu0 %v3293_v6  ;;  %2375 = vmatpush1.bf16.msra.mxu1 %v3295_v7 }
  0x3b   :  { %2345 = vmatprep.subr.bf16.mxu0 %v3305_v11  ;;  %2377 = vmatprep.subr.bf16.mxu1 %v3307_v12 }
  0x3e   :  { %2347 = vmatpush1.bf16.msra.mxu0 %v3329_v23  ;;  %2379 = vmatpush1.bf16.msra.mxu1 %v3331_v24 }
  0x3f   :  { %2349 = vmatprep.subr.bf16.mxu0 %v3341_v28  ;;  %2381 = vmatprep.subr.bf16.mxu1 %v3343_v29 }
  0x42   :  { %2351 = vmatpush1.bf16.msra.mxu0 %v3365_v40  ;;  %2383 = vmatpush1.bf16.msra.mxu1 %v3367_v41 }
  0x43   :  { %2353 = vmatprep.subr.bf16.mxu0 %v3374_v43  ;;  %2385 = vmatprep.subr.bf16.mxu1 %v3376_v44 }
  0x46   :  { %2355 = vmatpush1.bf16.msra.mxu0 %v3389_v52  ;;  %2387 = vmatpush1.bf16.msra.mxu1 %v3391_v53 }
  0x47   :  { %2389 = vmatprep.subr.bf16.mxu0 %v3107_v9  ;;  %2421 = vmatprep.subr.bf16.mxu1 %v3120_v13 }
  0xdb   :  { %v3435_v54 = vpop.f32.mrb[0].mxu0 }
  0xdc   :  { %v3437_v55 = vpop.f32.mrb[1].mxu0  ;;  %v3439_v56 = vpop.f32.mrb[0].mxu1 }
  0xdd   :  { %v3441_v59 = vpop.f32.mrb[1].mxu1 }
  0xfc   :  { %v331_v8 = vpop.f32.mrb[2].mxu0  ;;  %v402_v10 = vpop.f32.mrb[2].mxu1 }
  0xfd   :  { %v407_v15 = vadd.f32 %v331_v8, %v3435_v54  ;;  %v409_v16 = vadd.f32 %v402_v10, %v3439_v56  ;;  %v333_v19 = vpop.f32.mrb[3].mxu0  ;;  %v404_v20 = vpop.f32.mrb[3].mxu1 }
  0xfe   :  { %v408_v21 = vadd.f32 %v333_v19, %v3437_v55  ;;  %v410_v25 = vadd.f32 %v404_v20, %v3441_v59 }
  0xff   :  { %v432_v27 = vadd.f32 %v3449_v3, %v407_v15  ;;  %v434_v39 = vadd.f32 %v3461_v32, %v409_v16 }
 0x100   :  { %v433_v34 = vadd.f32 %v3453_v14, %v408_v21  ;;  %v435_v47 = vadd.f32 %v3468_v42, %v410_v25 }
 0x101   :  { %v436_v37 = vmul.f32 0.5, %v432_v27 }
 0x102   :  { %v440_v38 = vmul.f32 0.5, %v433_v34  ;;  %v445_v48 = vmul.f32 0.5, %v435_v47 }
 0x103   :  { %2904 = vtanh.f32 %v436_v37 }
 0x104   :  { %2906 = vtanh.f32 %v440_v38 }
 0x105   :  { %2908 = vtanh.f32 %v434_v39 }
 0x106   :  { %2910 = vtanh.f32 %v445_v48 }
 0x10d   :  { %v2905_v51 = vpop.eup %2904 }
 0x10e   :  { %v2907_v60 = vpop.eup %2906  ;;  %v438_v2 = vmul.f32 0.5, %v2905_v51 }
 0x10f   :  { %v442_v63 = vmul.f32 0.5, %v2907_v60  ;;  %v2909_v10 = vpop.eup %2908 }
 0x110   :  { %v439_v8 = vadd.f32 0.5, %v438_v2  ;;  %v2911_v1 = vpop.eup %2910 }
 0x111   :  { %v443_v15 = vadd.f32 0.5, %v442_v63  ;;  %v447_v16 = vmul.f32 0.5, %v2911_v1 }
 0x112   :  { %v450_v19 = vmul.f32 %v2909_v10, %v439_v8 }
 0x113   :  { %v449_v20 = vmul.f32 0.0, %v443_v15  ;;  %v448_v27 = vadd.f32 0.5, %v447_v16 }
 0x115   :  { %v3471_v21 = vadd.f32 %v450_v19, %v449_v20 }
 0x117   :  { %2912 = vtanh.f32 %v3471_v21 }
 0x121   :  { %v2913_v34 = vpop.eup %2912 }
 0x122   :  { %v453_v25 = vmul.f32 %v2913_v34, %v448_v27 }
 0x124   :  { %519 = vmatmul.mubr.f32.vlgmr.msra.gmra.mrb[4].mxu0 %v453_v25  ;;  %590 = vmatmul.mubr.f32.vlgmr.msra.gmra.mrb[4].mxu1 %v453_v25 }
 0x125   :  { %2391 = vmatpush1.bf16.msra.mxu0 %v3133_v17  ;;  %2423 = vmatpush1.bf16.msra.mxu1 %v3135_v18 }
 0x126   :  { %2393 = vmatprep.subr.bf16.mxu0 %v3148_v22  ;;  %2425 = vmatprep.subr.bf16.mxu1 %v3161_v26 }
 0x127   :  { %704 = vmatprep.mubr.f32.mxu0 %v3030_v5  ;;  %775 = vmatprep.mubr.f32.mxu1 %v3030_v5 }
 0x129   :  { %2395 = vmatpush1.bf16.msra.mxu0 %v3174_v30  ;;  %2427 = vmatpush1.bf16.msra.mxu1 %v3176_v31 }
 0x12a   :  { %2397 = vmatprep.subr.bf16.mxu0 %v3189_v35  ;;  %2429 = vmatprep.subr.bf16.mxu1 %v3191_v36 }
 0x12d   :  { %2399 = vmatpush1.bf16.msra.mxu0 %v3221_v45  ;;  %2431 = vmatpush1.bf16.msra.mxu1 %v3223_v46 }
 0x12e   :  { %2401 = vmatprep.subr.bf16.mxu0 %v3233_v49  ;;  %2433 = vmatprep.subr.bf16.mxu1 %v3235_v50 }
 0x131   :  { %2403 = vmatpush1.bf16.msra.mxu0 %v3257_v57  ;;  %2435 = vmatpush1.bf16.msra.mxu1 %v3259_v58 }
 0x132   :  { %2405 = vmatprep.subr.bf16.mxu0 %v3269_v61  ;;  %2437 = vmatprep.subr.bf16.mxu1 %v3271_v62 }
 0x135   :  { %2407 = vmatpush1.bf16.msra.mxu0 %v3293_v6  ;;  %2439 = vmatpush1.bf16.msra.mxu1 %v3295_v7 }
 0x136   :  { %2409 = vmatprep.subr.bf16.mxu0 %v3305_v11  ;;  %2441 = vmatprep.subr.bf16.mxu1 %v3307_v12 }
 0x139   :  { %2411 = vmatpush1.bf16.msra.mxu0 %v3329_v23  ;;  %2443 = vmatpush1.bf16.msra.mxu1 %v3331_v24 }
 0x13a   :  { %2413 = vmatprep.subr.bf16.mxu0 %v3341_v28  ;;  %2445 = vmatprep.subr.bf16.mxu1 %v3343_v29 }
 0x13d   :  { %2415 = vmatpush1.bf16.msra.mxu0 %v3365_v40  ;;  %2447 = vmatpush1.bf16.msra.mxu1 %v3367_v41 }
 0x13e   :  { %2417 = vmatprep.subr.bf16.mxu0 %v3374_v43  ;;  %2449 = vmatprep.subr.bf16.mxu1 %v3376_v44 }
 0x141   :  { %2419 = vmatpush1.bf16.msra.mxu0 %v3389_v52  ;;  %2451 = vmatpush1.bf16.msra.mxu1 %v3391_v53 }
 0x142   :  { %2453 = vmatprep.subr.bf16.mxu0 %v3107_v9  ;;  %2485 = vmatprep.subr.bf16.mxu1 %v3120_v13 }
 0x1f7   :  { %v520_v37 = vpop.f32.mrb[4].mxu0  ;;  %v591_v38 = vpop.f32.mrb[4].mxu1 }
 0x1f8   :  { %v600_v39 = vrot.slane %v520_v37, 7  ;;  %v602_v47 = vrot.slane %v591_v38, 7  ;;  %v522_v48 = vpop.f32.mrb[5].mxu0  ;;  %v593_v51 = vpop.f32.mrb[5].mxu1 }
 0x1f9   :  { %v601_v60 = vrot.slane %v522_v48, 7  ;;  %v603_v2 = vrot.slane %v593_v51, 7 }
 0x1fa   :  { %v608_v63 = vadd.f32 %v600_v39, %v3435_v54  ;;  %v610_v8 = vadd.f32 %v602_v47, %v3439_v56 }
 0x1fb   :  { %v609_v10 = vadd.f32 %v601_v60, %v3437_v55  ;;  %v611_v15 = vadd.f32 %v603_v2, %v3441_v59  ;;  %v630_v60 = vrot.slane %v3471_v21, 7 }
 0x1fc   :  { %v612_v19 = vadd.f32 %v608_v63, %v3449_v3  ;;  %v614_v27 = vadd.f32 %v610_v8, %v3461_v32 }
 0x1fd   :  { %v613_v20 = vadd.f32 %v609_v10, %v3453_v14  ;;  %v615_v34 = vadd.f32 %v611_v15, %v3468_v42 }
 0x1fe   :  { %v616_v1 = vmul.f32 0.5, %v612_v19 }
 0x1ff   :  { %v620_v16 = vmul.f32 0.5, %v613_v20  ;;  %v625_v25 = vmul.f32 0.5, %v615_v34 }
 0x200   :  { %2914 = vtanh.f32 %v616_v1 }
 0x201   :  { %2916 = vtanh.f32 %v620_v16 }
 0x202   :  { %2918 = vtanh.f32 %v614_v27 }
 0x203   :  { %2920 = vtanh.f32 %v625_v25 }
 0x20a   :  { %v2915_v37 = vpop.eup %2914 }
 0x20b   :  { %v2917_v38 = vpop.eup %2916  ;;  %v618_v39 = vmul.f32 0.5, %v2915_v37 }
 0x20c   :  { %v622_v47 = vmul.f32 0.5, %v2917_v38  ;;  %v2919_v51 = vpop.eup %2918 }
 0x20d   :  { %v619_v48 = vadd.f32 0.5, %v618_v39  ;;  %v2921_v8 = vpop.eup %2920 }
 0x20e   :  { %v623_v2 = vadd.f32 0.5, %v622_v47  ;;  %v627_v20 = vmul.f32 0.5, %v2921_v8 }
 0x20f   :  { %v633_v63 = vmul.f32 %v2919_v51, %v619_v48 }
 0x210   :  { %v632_v10 = vmul.f32 %v630_v60, %v623_v2  ;;  %v628_v15 = vadd.f32 0.5, %v627_v20 }
 0x212   :  { %v3517_v19 = vadd.f32 %v633_v63, %v632_v10 }
 0x214   :  { %2922 = vtanh.f32 %v3517_v19 }
 0x21e   :  { %v2923_v1 = vpop.eup %2922 }
 0x21f   :  { %v636_v16 = vmul.f32 %v2923_v1, %v628_v15 }
 0x221   :  { %v638_v27 = vrot.slane %v636_v16, 1 }
 0x223   :  { %705 = vmatmul.mubr.f32.vlgmr.msra.gmra.mrb[6].mxu0 %v638_v27  ;;  %776 = vmatmul.mubr.f32.vlgmr.msra.gmra.mrb[6].mxu1 %v638_v27 }
 0x224   :  { %2455 = vmatpush1.bf16.msra.mxu0 %v3133_v17  ;;  %2487 = vmatpush1.bf16.msra.mxu1 %v3135_v18 }
 0x225   :  { %2457 = vmatprep.subr.bf16.mxu0 %v3148_v22  ;;  %2489 = vmatprep.subr.bf16.mxu1 %v3161_v26 }
 0x226   :  { %890 = vmatprep.mubr.f32.mxu0 %v3030_v5  ;;  %961 = vmatprep.mubr.f32.mxu1 %v3030_v5 }
 0x228   :  { %2459 = vmatpush1.bf16.msra.mxu0 %v3174_v30  ;;  %2491 = vmatpush1.bf16.msra.mxu1 %v3176_v31 }
 0x229   :  { %2461 = vmatprep.subr.bf16.mxu0 %v3189_v35  ;;  %2493 = vmatprep.subr.bf16.mxu1 %v3191_v36 }
 0x22c   :  { %2463 = vmatpush1.bf16.msra.mxu0 %v3221_v45  ;;  %2495 = vmatpush1.bf16.msra.mxu1 %v3223_v46 }
 0x22d   :  { %2465 = vmatprep.subr.bf16.mxu0 %v3233_v49  ;;  %2497 = vmatprep.subr.bf16.mxu1 %v3235_v50 }
 0x230   :  { %2467 = vmatpush1.bf16.msra.mxu0 %v3257_v57  ;;  %2499 = vmatpush1.bf16.msra.mxu1 %v3259_v58 }
 0x231   :  { %2469 = vmatprep.subr.bf16.mxu0 %v3269_v61  ;;  %2501 = vmatprep.subr.bf16.mxu1 %v3271_v62 }
 0x234   :  { %2471 = vmatpush1.bf16.msra.mxu0 %v3293_v6  ;;  %2503 = vmatpush1.bf16.msra.mxu1 %v3295_v7 }
 0x235   :  { %2473 = vmatprep.subr.bf16.mxu0 %v3305_v11  ;;  %2505 = vmatprep.subr.bf16.mxu1 %v3307_v12 }
 0x238   :  { %2475 = vmatpush1.bf16.msra.mxu0 %v3329_v23  ;;  %2507 = vmatpush1.bf16.msra.mxu1 %v3331_v24 }
 0x239   :  { %2477 = vmatprep.subr.bf16.mxu0 %v3341_v28  ;;  %2509 = vmatprep.subr.bf16.mxu1 %v3343_v29 }
 0x23c   :  { %2479 = vmatpush1.bf16.msra.mxu0 %v3365_v40  ;;  %2511 = vmatpush1.bf16.msra.mxu1 %v3367_v41 }
 0x23d   :  { %2481 = vmatprep.subr.bf16.mxu0 %v3374_v43  ;;  %2513 = vmatprep.subr.bf16.mxu1 %v3376_v44 }
 0x240   :  { %2483 = vmatpush1.bf16.msra.mxu0 %v3389_v52  ;;  %2515 = vmatpush1.bf16.msra.mxu1 %v3391_v53 }
 0x241   :  { %2517 = vmatprep.subr.bf16.mxu0 %v3107_v9  ;;  %2549 = vmatprep.subr.bf16.mxu1 %v3120_v13 }
 0x2f6   :  { %v706_v21 = vpop.f32.mrb[6].mxu0  ;;  %v777_v34 = vpop.f32.mrb[6].mxu1 }
 0x2f7   :  { %v786_v25 = vrot.slane %v706_v21, 6  ;;  %v788_v37 = vrot.slane %v777_v34, 6  ;;  %v708_v38 = vpop.f32.mrb[7].mxu0  ;;  %v779_v39 = vpop.f32.mrb[7].mxu1 }
 0x2f8   :  { %v787_v47 = vrot.slane %v708_v38, 6  ;;  %v789_v48 = vrot.slane %v779_v39, 6 }
 0x2f9   :  { %v794_v51 = vadd.f32 %v786_v25, %v3435_v54  ;;  %v796_v60 = vadd.f32 %v788_v37, %v3439_v56 }
 0x2fa   :  { %v795_v2 = vadd.f32 %v787_v47, %v3437_v55  ;;  %v797_v63 = vadd.f32 %v789_v48, %v3441_v59  ;;  %v816_v48 = vrot.slane %v3517_v19, 7 }
 0x2fb   :  { %v798_v10 = vadd.f32 %v794_v51, %v3449_v3  ;;  %v800_v1 = vadd.f32 %v796_v60, %v3461_v32 }
 0x2fc   :  { %v799_v8 = vadd.f32 %v795_v2, %v3453_v14  ;;  %v801_v16 = vadd.f32 %v797_v63, %v3468_v42 }
 0x2fd   :  { %v802_v20 = vmul.f32 0.5, %v798_v10 }
 0x2fe   :  { %v806_v15 = vmul.f32 0.5, %v799_v8  ;;  %v811_v27 = vmul.f32 0.5, %v801_v16 }
 0x2ff   :  { %2924 = vtanh.f32 %v802_v20 }
 0x300   :  { %2926 = vtanh.f32 %v806_v15 }
 0x301   :  { %2928 = vtanh.f32 %v800_v1 }
 0x302   :  { %2930 = vtanh.f32 %v811_v27 }
 0x309   :  { %v2925_v21 = vpop.eup %2924 }
 0x30a   :  { %v2927_v34 = vpop.eup %2926  ;;  %v804_v25 = vmul.f32 0.5, %v2925_v21 }
 0x30b   :  { %v808_v37 = vmul.f32 0.5, %v2927_v34  ;;  %v2929_v39 = vpop.eup %2928 }
 0x30c   :  { %v805_v38 = vadd.f32 0.5, %v804_v25  ;;  %v2931_v60 = vpop.eup %2930 }
 0x30d   :  { %v809_v47 = vadd.f32 0.5, %v808_v37  ;;  %v813_v8 = vmul.f32 0.5, %v2931_v60 }
 0x30e   :  { %v819_v51 = vmul.f32 %v2929_v39, %v805_v38 }
 0x30f   :  { %v818_v2 = vmul.f32 %v816_v48, %v809_v47  ;;  %v814_v63 = vadd.f32 0.5, %v813_v8 }
 0x311   :  { %v3563_v10 = vadd.f32 %v819_v51, %v818_v2 }
 0x313   :  { %2932 = vtanh.f32 %v3563_v10 }
 0x31d   :  { %v2933_v20 = vpop.eup %2932 }
 0x31e   :  { %v822_v15 = vmul.f32 %v2933_v20, %v814_v63 }
 0x320   :  { %v824_v1 = vrot.slane %v822_v15, 2 }
 0x322   :  { %891 = vmatmul.mubr.f32.vlgmr.msra.gmra.mrb[8].mxu0 %v824_v1  ;;  %962 = vmatmul.mubr.f32.vlgmr.msra.gmra.mrb[8].mxu1 %v824_v1 }
 0x323   :  { %2519 = vmatpush1.bf16.msra.mxu0 %v3133_v17  ;;  %2551 = vmatpush1.bf16.msra.mxu1 %v3135_v18 }
 0x324   :  { %2521 = vmatprep.subr.bf16.mxu0 %v3148_v22  ;;  %2553 = vmatprep.subr.bf16.mxu1 %v3161_v26 }
 0x325   :  { %1076 = vmatprep.mubr.f32.mxu0 %v3030_v5  ;;  %1147 = vmatprep.mubr.f32.mxu1 %v3030_v5 }
 0x327   :  { %2523 = vmatpush1.bf16.msra.mxu0 %v3174_v30  ;;  %2555 = vmatpush1.bf16.msra.mxu1 %v3176_v31 }
 0x328   :  { %2525 = vmatprep.subr.bf16.mxu0 %v3189_v35  ;;  %2557 = vmatprep.subr.bf16.mxu1 %v3191_v36 }
 0x32b   :  { %2527 = vmatpush1.bf16.msra.mxu0 %v3221_v45  ;;  %2559 = vmatpush1.bf16.msra.mxu1 %v3223_v46 }
 0x32c   :  { %2529 = vmatprep.subr.bf16.mxu0 %v3233_v49  ;;  %2561 = vmatprep.subr.bf16.mxu1 %v3235_v50 }
 0x32f   :  { %2531 = vmatpush1.bf16.msra.mxu0 %v3257_v57  ;;  %2563 = vmatpush1.bf16.msra.mxu1 %v3259_v58 }
 0x330   :  { %2533 = vmatprep.subr.bf16.mxu0 %v3269_v61  ;;  %2565 = vmatprep.subr.bf16.mxu1 %v3271_v62 }
 0x333   :  { %2535 = vmatpush1.bf16.msra.mxu0 %v3293_v6  ;;  %2567 = vmatpush1.bf16.msra.mxu1 %v3295_v7 }
 0x334   :  { %2537 = vmatprep.subr.bf16.mxu0 %v3305_v11  ;;  %2569 = vmatprep.subr.bf16.mxu1 %v3307_v12 }
 0x337   :  { %2539 = vmatpush1.bf16.msra.mxu0 %v3329_v23  ;;  %2571 = vmatpush1.bf16.msra.mxu1 %v3331_v24 }
 0x338   :  { %2541 = vmatprep.subr.bf16.mxu0 %v3341_v28  ;;  %2573 = vmatprep.subr.bf16.mxu1 %v3343_v29 }
 0x33b   :  { %2543 = vmatpush1.bf16.msra.mxu0 %v3365_v40  ;;  %2575 = vmatpush1.bf16.msra.mxu1 %v3367_v41 }
 0x33c   :  { %2545 = vmatprep.subr.bf16.mxu0 %v3374_v43  ;;  %2577 = vmatprep.subr.bf16.mxu1 %v3376_v44 }
 0x33f   :  { %2547 = vmatpush1.bf16.msra.mxu0 %v3389_v52  ;;  %2579 = vmatpush1.bf16.msra.mxu1 %v3391_v53 }
 0x340   :  { %2581 = vmatprep.subr.bf16.mxu0 %v3107_v9  ;;  %2613 = vmatprep.subr.bf16.mxu1 %v3120_v13 }
 0x3f5   :  { %v892_v19 = vpop.f32.mrb[8].mxu0  ;;  %v963_v16 = vpop.f32.mrb[8].mxu1 }
 0x3f6   :  { %v972_v27 = vrot.slane %v892_v19, 5  ;;  %v974_v21 = vrot.slane %v963_v16, 5  ;;  %v894_v34 = vpop.f32.mrb[9].mxu0  ;;  %v965_v25 = vpop.f32.mrb[9].mxu1 }
 0x3f7   :  { %v973_v37 = vrot.slane %v894_v34, 5  ;;  %v975_v38 = vrot.slane %v965_v25, 5 }
 0x3f8   :  { %v980_v39 = vadd.f32 %v972_v27, %v3435_v54  ;;  %v982_v47 = vadd.f32 %v974_v21, %v3439_v56 }
 0x3f9   :  { %v981_v48 = vadd.f32 %v973_v37, %v3437_v55  ;;  %v983_v51 = vadd.f32 %v975_v38, %v3441_v59  ;;  %v1002_v38 = vrot.slane %v3563_v10, 7 }
 0x3fa   :  { %v984_v2 = vadd.f32 %v980_v39, %v3449_v3  ;;  %v986_v20 = vadd.f32 %v982_v47, %v3461_v32 }
 0x3fb   :  { %v985_v60 = vadd.f32 %v981_v48, %v3453_v14  ;;  %v987_v15 = vadd.f32 %v983_v51, %v3468_v42 }
 0x3fc   :  { %v988_v8 = vmul.f32 0.5, %v984_v2 }
 0x3fd   :  { %v992_v63 = vmul.f32 0.5, %v985_v60  ;;  %v997_v1 = vmul.f32 0.5, %v987_v15 }
 0x3fe   :  { %2934 = vtanh.f32 %v988_v8 }
 0x3ff   :  { %2936 = vtanh.f32 %v992_v63 }
 0x400   :  { %2938 = vtanh.f32 %v986_v20 }
 0x401   :  { %2940 = vtanh.f32 %v997_v1 }
 0x408   :  { %v2935_v19 = vpop.eup %2934 }
 0x409   :  { %v2937_v16 = vpop.eup %2936  ;;  %v990_v27 = vmul.f32 0.5, %v2935_v19 }
 0x40a   :  { %v994_v21 = vmul.f32 0.5, %v2937_v16  ;;  %v2939_v25 = vpop.eup %2938 }
 0x40b   :  { %v991_v34 = vadd.f32 0.5, %v990_v27  ;;  %v2941_v47 = vpop.eup %2940 }
 0x40c   :  { %v995_v37 = vadd.f32 0.5, %v994_v21  ;;  %v999_v60 = vmul.f32 0.5, %v2941_v47 }
 0x40d   :  { %v1005_v39 = vmul.f32 %v2939_v25, %v991_v34 }
 0x40e   :  { %v1004_v48 = vmul.f32 %v1002_v38, %v995_v37  ;;  %v1000_v51 = vadd.f32 0.5, %v999_v60 }
 0x410   :  { %v3609_v2 = vadd.f32 %v1005_v39, %v1004_v48 }
 0x412   :  { %2942 = vtanh.f32 %v3609_v2 }
 0x41c   :  { %v2943_v8 = vpop.eup %2942 }
 0x41d   :  { %v1008_v63 = vmul.f32 %v2943_v8, %v1000_v51 }
 0x41f   :  { %v1010_v20 = vrot.slane %v1008_v63, 3 }
 0x421   :  { %1077 = vmatmul.mubr.f32.vlgmr.msra.gmra.mrb[10].mxu0 %v1010_v20  ;;  %1148 = vmatmul.mubr.f32.vlgmr.msra.gmra.mrb[10].mxu1 %v1010_v20 }
 0x422   :  { %2583 = vmatpush1.bf16.msra.mxu0 %v3133_v17  ;;  %2615 = vmatpush1.bf16.msra.mxu1 %v3135_v18 }
 0x423   :  { %2585 = vmatprep.subr.bf16.mxu0 %v3148_v22  ;;  %2617 = vmatprep.subr.bf16.mxu1 %v3161_v26 }
 0x424   :  { %1262 = vmatprep.mubr.f32.mxu0 %v3030_v5  ;;  %1333 = vmatprep.mubr.f32.mxu1 %v3030_v5 }
 0x426   :  { %2587 = vmatpush1.bf16.msra.mxu0 %v3174_v30  ;;  %2619 = vmatpush1.bf16.msra.mxu1 %v3176_v31 }
 0x427   :  { %2589 = vmatprep.subr.bf16.mxu0 %v3189_v35  ;;  %2621 = vmatprep.subr.bf16.mxu1 %v3191_v36 }
 0x42a   :  { %2591 = vmatpush1.bf16.msra.mxu0 %v3221_v45  ;;  %2623 = vmatpush1.bf16.msra.mxu1 %v3223_v46 }
 0x42b   :  { %2593 = vmatprep.subr.bf16.mxu0 %v3233_v49  ;;  %2625 = vmatprep.subr.bf16.mxu1 %v3235_v50 }
 0x42e   :  { %2595 = vmatpush1.bf16.msra.mxu0 %v3257_v57  ;;  %2627 = vmatpush1.bf16.msra.mxu1 %v3259_v58 }
 0x42f   :  { %2597 = vmatprep.subr.bf16.mxu0 %v3269_v61  ;;  %2629 = vmatprep.subr.bf16.mxu1 %v3271_v62 }
 0x432   :  { %2599 = vmatpush1.bf16.msra.mxu0 %v3293_v6  ;;  %2631 = vmatpush1.bf16.msra.mxu1 %v3295_v7 }
 0x433   :  { %2601 = vmatprep.subr.bf16.mxu0 %v3305_v11  ;;  %2633 = vmatprep.subr.bf16.mxu1 %v3307_v12 }
 0x436   :  { %2603 = vmatpush1.bf16.msra.mxu0 %v3329_v23  ;;  %2635 = vmatpush1.bf16.msra.mxu1 %v3331_v24 }
 0x437   :  { %2605 = vmatprep.subr.bf16.mxu0 %v3341_v28  ;;  %2637 = vmatprep.subr.bf16.mxu1 %v3343_v29 }
 0x43a   :  { %2607 = vmatpush1.bf16.msra.mxu0 %v3365_v40  ;;  %2639 = vmatpush1.bf16.msra.mxu1 %v3367_v41 }
 0x43b   :  { %2609 = vmatprep.subr.bf16.mxu0 %v3374_v43  ;;  %2641 = vmatprep.subr.bf16.mxu1 %v3376_v44 }
 0x43e   :  { %2611 = vmatpush1.bf16.msra.mxu0 %v3389_v52  ;;  %2643 = vmatpush1.bf16.msra.mxu1 %v3391_v53 }
 0x43f   :  { %2645 = vmatprep.subr.bf16.mxu0 %v3107_v9  ;;  %2677 = vmatprep.subr.bf16.mxu1 %v3120_v13 }
 0x4f4   :  { %v1078_v10 = vpop.f32.mrb[10].mxu0  ;;  %v1149_v15 = vpop.f32.mrb[10].mxu1 }
 0x4f5   :  { %v1158_v1 = vrot.slane %v1078_v10, 4  ;;  %v1160_v19 = vrot.slane %v1149_v15, 4  ;;  %v1080_v16 = vpop.f32.mrb[11].mxu0  ;;  %v1151_v27 = vpop.f32.mrb[11].mxu1 }
 0x4f6   :  { %v1159_v21 = vrot.slane %v1080_v16, 4  ;;  %v1161_v34 = vrot.slane %v1151_v27, 4 }
 0x4f7   :  { %v1166_v25 = vadd.f32 %v1158_v1, %v3435_v54  ;;  %v1168_v37 = vadd.f32 %v1160_v19, %v3439_v56 }
 0x4f8   :  { %v1167_v38 = vadd.f32 %v1159_v21, %v3437_v55  ;;  %v1169_v39 = vadd.f32 %v1161_v34, %v3441_v59  ;;  %v1188_v34 = vrot.slane %v3609_v2, 7 }
 0x4f9   :  { %v1170_v48 = vadd.f32 %v1166_v25, %v3449_v3  ;;  %v1172_v8 = vadd.f32 %v1168_v37, %v3461_v32 }
 0x4fa   :  { %v1171_v47 = vadd.f32 %v1167_v38, %v3453_v14  ;;  %v1173_v63 = vadd.f32 %v1169_v39, %v3468_v42 }
 0x4fb   :  { %v1174_v60 = vmul.f32 0.5, %v1170_v48 }
 0x4fc   :  { %v1178_v51 = vmul.f32 0.5, %v1171_v47  ;;  %v1183_v20 = vmul.f32 0.5, %v1173_v63 }
 0x4fd   :  { %2944 = vtanh.f32 %v1174_v60 }
 0x4fe   :  { %2946 = vtanh.f32 %v1178_v51 }
 0x4ff   :  { %2948 = vtanh.f32 %v1172_v8 }
 0x500   :  { %2950 = vtanh.f32 %v1183_v20 }
 0x507   :  { %v2945_v10 = vpop.eup %2944 }
 0x508   :  { %v2947_v15 = vpop.eup %2946  ;;  %v1176_v1 = vmul.f32 0.5, %v2945_v10 }
 0x509   :  { %v1180_v19 = vmul.f32 0.5, %v2947_v15  ;;  %v2949_v27 = vpop.eup %2948 }
 0x50a   :  { %v1177_v16 = vadd.f32 0.5, %v1176_v1  ;;  %v2951_v37 = vpop.eup %2950 }
 0x50b   :  { %v1181_v21 = vadd.f32 0.5, %v1180_v19  ;;  %v1185_v47 = vmul.f32 0.5, %v2951_v37 }
 0x50c   :  { %v1191_v25 = vmul.f32 %v2949_v27, %v1177_v16 }
 0x50d   :  { %v1190_v38 = vmul.f32 %v1188_v34, %v1181_v21  ;;  %v1186_v39 = vadd.f32 0.5, %v1185_v47 }
 0x50f   :  { %v3655_v48 = vadd.f32 %v1191_v25, %v1190_v38 }
 0x511   :  { %2952 = vtanh.f32 %v3655_v48 }
 0x51b   :  { %v2953_v60 = vpop.eup %2952 }
 0x51c   :  { %v1194_v51 = vmul.f32 %v2953_v60, %v1186_v39 }
 0x51e   :  { %v1196_v8 = vrot.slane %v1194_v51, 4 }
 0x520   :  { %1263 = vmatmul.mubr.f32.vlgmr.msra.gmra.mrb[12].mxu0 %v1196_v8  ;;  %1334 = vmatmul.mubr.f32.vlgmr.msra.gmra.mrb[12].mxu1 %v1196_v8 }
 0x521   :  { %2647 = vmatpush1.bf16.msra.mxu0 %v3133_v17  ;;  %2679 = vmatpush1.bf16.msra.mxu1 %v3135_v18 }
 0x522   :  { %2649 = vmatprep.subr.bf16.mxu0 %v3148_v22  ;;  %2681 = vmatprep.subr.bf16.mxu1 %v3161_v26 }
 0x523   :  { %1448 = vmatprep.mubr.f32.mxu0 %v3030_v5  ;;  %1519 = vmatprep.mubr.f32.mxu1 %v3030_v5 }
 0x525   :  { %2651 = vmatpush1.bf16.msra.mxu0 %v3174_v30  ;;  %2683 = vmatpush1.bf16.msra.mxu1 %v3176_v31 }
 0x526   :  { %2653 = vmatprep.subr.bf16.mxu0 %v3189_v35  ;;  %2685 = vmatprep.subr.bf16.mxu1 %v3191_v36 }
 0x529   :  { %2655 = vmatpush1.bf16.msra.mxu0 %v3221_v45  ;;  %2687 = vmatpush1.bf16.msra.mxu1 %v3223_v46 }
 0x52a   :  { %2657 = vmatprep.subr.bf16.mxu0 %v3233_v49  ;;  %2689 = vmatprep.subr.bf16.mxu1 %v3235_v50 }
 0x52d   :  { %2659 = vmatpush1.bf16.msra.mxu0 %v3257_v57  ;;  %2691 = vmatpush1.bf16.msra.mxu1 %v3259_v58 }
 0x52e   :  { %2661 = vmatprep.subr.bf16.mxu0 %v3269_v61  ;;  %2693 = vmatprep.subr.bf16.mxu1 %v3271_v62 }
 0x531   :  { %2663 = vmatpush1.bf16.msra.mxu0 %v3293_v6  ;;  %2695 = vmatpush1.bf16.msra.mxu1 %v3295_v7 }
 0x532   :  { %2665 = vmatprep.subr.bf16.mxu0 %v3305_v11  ;;  %2697 = vmatprep.subr.bf16.mxu1 %v3307_v12 }
 0x535   :  { %2667 = vmatpush1.bf16.msra.mxu0 %v3329_v23  ;;  %2699 = vmatpush1.bf16.msra.mxu1 %v3331_v24 }
 0x536   :  { %2669 = vmatprep.subr.bf16.mxu0 %v3341_v28  ;;  %2701 = vmatprep.subr.bf16.mxu1 %v3343_v29 }
 0x539   :  { %2671 = vmatpush1.bf16.msra.mxu0 %v3365_v40  ;;  %2703 = vmatpush1.bf16.msra.mxu1 %v3367_v41 }
 0x53a   :  { %2673 = vmatprep.subr.bf16.mxu0 %v3374_v43  ;;  %2705 = vmatprep.subr.bf16.mxu1 %v3376_v44 }
 0x53d   :  { %2675 = vmatpush1.bf16.msra.mxu0 %v3389_v52  ;;  %2707 = vmatpush1.bf16.msra.mxu1 %v3391_v53 }
 0x53e   :  { %2709 = vmatprep.subr.bf16.mxu0 %v3107_v9  ;;  %2741 = vmatprep.subr.bf16.mxu1 %v3120_v13 }
 0x5f3   :  { %v1264_v2 = vpop.f32.mrb[12].mxu0  ;;  %v1335_v63 = vpop.f32.mrb[12].mxu1 }
 0x5f4   :  { %v1344_v20 = vrot.slane %v1264_v2, 3  ;;  %v1346_v10 = vrot.slane %v1335_v63, 3  ;;  %v1266_v15 = vpop.f32.mrb[13].mxu0  ;;  %v1337_v1 = vpop.f32.mrb[13].mxu1 }
 0x5f5   :  { %v1345_v19 = vrot.slane %v1266_v15, 3  ;;  %v1347_v16 = vrot.slane %v1337_v1, 3  ;;  %v1374_v1 = vrot.slane %v3655_v48, 7 }
 0x5f6   :  { %v1352_v27 = vadd.f32 %v1344_v20, %v3435_v54  ;;  %v1354_v21 = vadd.f32 %v1346_v10, %v3439_v56 }
 0x5f7   :  { %v1353_v34 = vadd.f32 %v1345_v19, %v3437_v55  ;;  %v1355_v25 = vadd.f32 %v1347_v16, %v3441_v59 }
 0x5f8   :  { %v1356_v9 = vadd.f32 %v1352_v27, %v3449_v3  ;;  %v1358_v47 = vadd.f32 %v1354_v21, %v3461_v32 }
 0x5f9   :  { %v1357_v13 = vadd.f32 %v1353_v34, %v3453_v14  ;;  %v1359_v39 = vadd.f32 %v1355_v25, %v3468_v42 }
 0x5fa   :  { %v1360_v38 = vmul.f32 0.5, %v1356_v9 }
 0x5fb   :  { %v1364_v37 = vmul.f32 0.5, %v1357_v13  ;;  %v1369_v60 = vmul.f32 0.5, %v1359_v39 }
 0x5fc   :  { %2954 = vtanh.f32 %v1360_v38 }
 0x5fd   :  { %2956 = vtanh.f32 %v1364_v37 }
 0x5fe   :  { %2958 = vtanh.f32 %v1358_v47 }
 0x5ff   :  { %2960 = vtanh.f32 %v1369_v60 }
 0x606   :  { %v2955_v51 = vpop.eup %2954 }
 0x607   :  { %v2957_v8 = vpop.eup %2956  ;;  %v1362_v2 = vmul.f32 0.5, %v2955_v51 }
 0x608   :  { %v1366_v63 = vmul.f32 0.5, %v2957_v8  ;;  %v2959_v10 = vpop.eup %2958  ;;  %v1755_v8 = vld [vmem:[%s4176_s4 + $0x8] sm:$0xff] }
 0x609   :  { %v1363_v20 = vadd.f32 0.5, %v1362_v2  ;;  %v2961_v21 = vpop.eup %2960  ;;  %v1759_v2 = vld [vmem:[%s4176_s4 + $0x28] sm:$0xff] }
 0x60a   :  { %v1367_v15 = vadd.f32 0.5, %v1366_v63  ;;  %v1371_v34 = vmul.f32 0.5, %v2961_v21  ;;  %v1757_v63 = vld [vmem:[%s4176_s4 + $0x18] sm:$0xff]  ;;  %v1760_v21 = vld [vmem:[%s4176_s4 + $0x30] sm:$0xff] }
 0x60b   :  { %v1377_v19 = vmul.f32 %v2959_v10, %v1363_v20  ;;  %v2772_v20 = vpack.c.bf16 %v1759_v2, %v1755_v8  ;;  %v1761_v10 = vld [vmem:[%s4176_s4 + $0x38] sm:$0xff] }
 0x60c   :  { %v1376_v16 = vmul.f32 %v1374_v1, %v1367_v15  ;;  %v1372_v25 = vadd.f32 0.5, %v1371_v34  ;;  %v1754_v15 = vld [vmem:[%s4176_s4] sm:$0xff]  ;;  %v1789_v8 = vld [vmem:[%s4176_s4 + $0x118] sm:$0xff] }
 0x60d   :  { %v1758_v1 = vld [vmem:[%s4176_s4 + $0x20] sm:$0xff]  ;;  %v1793_v2 = vld [vmem:[%s4176_s4 + $0x138] sm:$0xff] }
 0x60e   :  { %v3701_v27 = vadd.f32 %v1377_v19, %v1376_v16  ;;  %v2804_v19 = vpack.c.bf16 %v1761_v10, %v1757_v63  ;;  %v2774_v16 = vpack.c.bf16 %v1758_v1, %v1754_v15  ;;  %v1786_v63 = vld [vmem:[%s4176_s4 + $0x100] sm:$0xff]  ;;  %v1788_v15 = vld [vmem:[%s4176_s4 + $0x110] sm:$0xff] }
 0x60f   :  { %v1790_v10 = vld [vmem:[%s4176_s4 + $0x120] sm:$0xff]  ;;  %v1792_v1 = vld [vmem:[%s4176_s4 + $0x130] sm:$0xff] }
 0x610   :  { %2962 = vtanh.f32 %v3701_v27 }
 0x61a   :  { %v2963_v9 = vpop.eup %2962 }
 0x61b   :  { %v1380_v13 = vmul.f32 %v2963_v9, %v1372_v25  ;;  %v1763_v25 = vld [vmem:[%s4176_s4 + $0x48] sm:$0xff] }
 0x61c   :  { %v1767_v9 = vld [vmem:[%s4176_s4 + $0x68] sm:$0xff] }
 0x61d   :  { %v1382_v38 = vrot.slane %v1380_v13, 5  ;;  %v1765_v13 = vld [vmem:[%s4176_s4 + $0x58] sm:$0xff] }
 0x61f   :  { %1449 = vmatmul.mubr.f32.vlgmr.msra.gmra.mrb[14].mxu0 %v1382_v38  ;;  %1520 = vmatmul.mubr.f32.vlgmr.msra.gmra.mrb[14].mxu1 %v1382_v38  ;;  %v2776_v38 = vpack.c.bf16 %v1767_v9, %v1763_v25  ;;  %v1801_v9 = vld [vmem:[%s4176_s4 + $0x178] sm:$0xff] }
 0x620   :  { %2711 = vmatpush1.bf16.msra.mxu0 %v3133_v17  ;;  %2743 = vmatpush1.bf16.msra.mxu1 %v3135_v18 }
 0x621   :  { %2713 = vmatprep.subr.bf16.mxu0 %v3148_v22  ;;  %2745 = vmatprep.subr.bf16.mxu1 %v3161_v26 }
 0x622   :  { %1634 = vmatprep.mubr.f32.mxu0 %v3030_v5  ;;  %1705 = vmatprep.mubr.f32.mxu1 %v3030_v5 }
 0x624   :  { %2715 = vmatpush1.bf16.msra.mxu0 %v3174_v30  ;;  %2747 = vmatpush1.bf16.msra.mxu1 %v3176_v31 }
 0x625   :  { %2717 = vmatprep.subr.bf16.mxu0 %v3189_v35  ;;  %2749 = vmatprep.subr.bf16.mxu1 %v3191_v36 }
 0x628   :  { %2719 = vmatpush1.bf16.msra.mxu0 %v3221_v45  ;;  %2751 = vmatpush1.bf16.msra.mxu1 %v3223_v46 }
 0x629   :  { %2721 = vmatprep.subr.bf16.mxu0 %v3233_v49  ;;  %2753 = vmatprep.subr.bf16.mxu1 %v3235_v50 }
 0x62c   :  { %2723 = vmatpush1.bf16.msra.mxu0 %v3257_v57  ;;  %2755 = vmatpush1.bf16.msra.mxu1 %v3259_v58 }
 0x62d   :  { %2725 = vmatprep.subr.bf16.mxu0 %v3269_v61  ;;  %2757 = vmatprep.subr.bf16.mxu1 %v3271_v62 }
 0x630   :  { %2727 = vmatpush1.bf16.msra.mxu0 %v3293_v6  ;;  %2759 = vmatpush1.bf16.msra.mxu1 %v3295_v7 }
 0x631   :  { %2729 = vmatprep.subr.bf16.mxu0 %v3305_v11  ;;  %2761 = vmatprep.subr.bf16.mxu1 %v3307_v12 }
 0x634   :  { %2731 = vmatpush1.bf16.msra.mxu0 %v3329_v23  ;;  %2763 = vmatpush1.bf16.msra.mxu1 %v3331_v24 }
 0x635   :  { %2733 = vmatprep.subr.bf16.mxu0 %v3341_v28  ;;  %2765 = vmatprep.subr.bf16.mxu1 %v3343_v29 }
 0x638   :  { %2735 = vmatpush1.bf16.msra.mxu0 %v3365_v40  ;;  %2767 = vmatpush1.bf16.msra.mxu1 %v3367_v41 }
 0x639   :  { %2737 = vmatprep.subr.bf16.mxu0 %v3374_v43  ;;  %2769 = vmatprep.subr.bf16.mxu1 %v3376_v44  ;;  %v1560_v43 = vrot.slane %v3701_v27, 7  ;;  %v1756_v27 = vld [vmem:[%s4176_s4 + $0x10] sm:$0xff] }
 0x63a   :  { %v2806_v34 = vpack.c.bf16 %v1760_v21, %v1756_v27  ;;  %v1799_v27 = vld [vmem:[%s4176_s4 + $0x168] sm:$0xff]  ;;  %v1797_v21 = vld [vmem:[%s4176_s4 + $0x158] sm:$0xff] }
 0x63c   :  { %2739 = vmatpush1.bf16.msra.mxu0 %v3389_v52  ;;  %2771 = vmatpush1.bf16.msra.mxu1 %v3391_v53 }
 0x63d   :  { %2773 = vmatprep.subr.bf16.mxu0 %v2772_v20  ;;  %2805 = vmatprep.subr.bf16.mxu1 %v2804_v19  ;;  %v2820_v20 = vpack.c.bf16 %v1793_v2, %v1789_v8  ;;  %v2790_v19 = vpack.c.bf16 %v1790_v10, %v1786_v63 }
 0x6f2   :  { %v1450_v17 = vpop.f32.mrb[14].mxu0  ;;  %v1521_v18 = vpop.f32.mrb[14].mxu1 }
 0x6f3   :  { %v1530_v22 = vrot.slane %v1450_v17, 2  ;;  %v1532_v26 = vrot.slane %v1521_v18, 2  ;;  %v1452_v30 = vpop.f32.mrb[15].mxu0  ;;  %v1523_v31 = vpop.f32.mrb[15].mxu1  ;;  %v1769_v17 = vld [vmem:[%s4176_s4 + $0x78] sm:$0xff]  ;;  %v1762_v18 = vld [vmem:[%s4176_s4 + $0x40] sm:$0xff] }
 0x6f4   :  { %v1531_v35 = vrot.slane %v1452_v30, 2  ;;  %v1533_v36 = vrot.slane %v1523_v31, 2  ;;  %v1764_v31 = vld [vmem:[%s4176_s4 + $0x50] sm:$0xff] }
 0x6f5   :  { %v1538_v45 = vadd.f32 %v1530_v22, %v3435_v54  ;;  %v1540_v46 = vadd.f32 %v1532_v26, %v3439_v56  ;;  %v1766_v22 = vld [vmem:[%s4176_s4 + $0x60] sm:$0xff]  ;;  %v2808_v26 = vpack.c.bf16 %v1769_v17, %v1765_v13  ;;  %v2824_v17 = vpack.c.bf16 %v1801_v9, %v1797_v21 }
 0x6f6   :  { %v1539_v49 = vadd.f32 %v1531_v35, %v3437_v55  ;;  %v1541_v50 = vadd.f32 %v1533_v36, %v3441_v59  ;;  %v2778_v30 = vpack.c.bf16 %v1766_v22, %v1762_v18  ;;  %v1768_v35 = vld [vmem:[%s4176_s4 + $0x70] sm:$0xff]  ;;  %v1794_v13 = vld [vmem:[%s4176_s4 + $0x140] sm:$0xff] }
 0x6f7   :  { %v1542_v57 = vadd.f32 %v1538_v45, %v3449_v3  ;;  %v1544_v6 = vadd.f32 %v1540_v46, %v3461_v32  ;;  %v2810_v36 = vpack.c.bf16 %v1768_v35, %v1764_v31  ;;  %v1771_v45 = vld [vmem:[%s4176_s4 + $0x88] sm:$0xff]  ;;  %v1796_v18 = vld [vmem:[%s4176_s4 + $0x150] sm:$0xff]  ;;  %v1805_v31 = vld [vmem:[%s4176_s4 + $0x198] sm:$0xff] }
 0x6f8   :  { %v1543_v58 = vadd.f32 %v1539_v49, %v3453_v14  ;;  %v1545_v7 = vadd.f32 %v1541_v50, %v3468_v42  ;;  %v1775_v46 = vld [vmem:[%s4176_s4 + $0xa8] sm:$0xff]  ;;  %v1773_v49 = vld [vmem:[%s4176_s4 + $0x98] sm:$0xff]  ;;  %v1800_v22 = vld [vmem:[%s4176_s4 + $0x170] sm:$0xff] }
 0x6f9   :  { %v1546_v61 = vmul.f32 0.5, %v1542_v57  ;;  %v2780_v50 = vpack.c.bf16 %v1775_v46, %v1771_v45  ;;  %v1777_v57 = vld [vmem:[%s4176_s4 + $0xb8] sm:$0xff]  ;;  %v2826_v45 = vpack.c.bf16 %v1800_v22, %v1796_v18 }
 0x6fa   :  { %v1550_v62 = vmul.f32 0.5, %v1543_v58  ;;  %v1555_v11 = vmul.f32 0.5, %v1545_v7  ;;  %v1770_v58 = vld [vmem:[%s4176_s4 + $0x80] sm:$0xff]  ;;  %v1772_v7 = vld [vmem:[%s4176_s4 + $0x90] sm:$0xff]  ;;  %v1809_v35 = vld [vmem:[%s4176_s4 + $0x1b8] sm:$0xff] }
 0x6fb   :  { %2964 = vtanh.f32 %v1546_v61  ;;  %v1774_v61 = vld [vmem:[%s4176_s4 + $0xa0] sm:$0xff] }
 0x6fc   :  { %2966 = vtanh.f32 %v1550_v62  ;;  %v2812_v62 = vpack.c.bf16 %v1777_v57, %v1773_v49  ;;  %v1802_v49 = vld [vmem:[%s4176_s4 + $0x180] sm:$0xff]  ;;  %v1804_v57 = vld [vmem:[%s4176_s4 + $0x190] sm:$0xff] }
 0x6fd   :  { %2968 = vtanh.f32 %v1544_v6  ;;  %v2782_v6 = vpack.c.bf16 %v1774_v61, %v1770_v58  ;;  %v2828_v58 = vpack.c.bf16 %v1809_v35, %v1805_v31  ;;  %v1808_v61 = vld [vmem:[%s4176_s4 + $0x1b0] sm:$0xff] }
 0x6fe   :  { %2970 = vtanh.f32 %v1555_v11  ;;  %v1776_v11 = vld [vmem:[%s4176_s4 + $0xb0] sm:$0xff] }
 0x705   :  { %v2965_v12 = vpop.eup %2964 }
 0x706   :  { %v2967_v23 = vpop.eup %2966  ;;  %v1548_v24 = vmul.f32 0.5, %v2965_v12  ;;  %v1779_v12 = vld [vmem:[%s4176_s4 + $0xc8] sm:$0xff] }
 0x707   :  { %v1552_v28 = vmul.f32 0.5, %v2967_v23  ;;  %v2969_v40 = vpop.eup %2968  ;;  %v2814_v23 = vpack.c.bf16 %v1776_v11, %v1772_v7  ;;  %v1813_v7 = vld [vmem:[%s4176_s4 + $0x1d8] sm:$0xff] }
 0x708   :  { %v1549_v29 = vadd.f32 0.5, %v1548_v24  ;;  %v2971_v48 = vpop.eup %2970  ;;  %v1783_v24 = vld [vmem:[%s4176_s4 + $0xe8] sm:$0xff]  ;;  %v1817_v11 = vld [vmem:[%s4176_s4 + $0x1f8] sm:$0xff] }
 0x709   :  { %v1553_v41 = vadd.f32 0.5, %v1552_v28  ;;  %v1557_v37 = vmul.f32 0.5, %v2971_v48  ;;  %v1781_v28 = vld [vmem:[%s4176_s4 + $0xd8] sm:$0xff] }
 0x70a   :  { %v1563_v44 = vmul.f32 %v2969_v40, %v1549_v29  ;;  %v1785_v29 = vld [vmem:[%s4176_s4 + $0xf8] sm:$0xff]  ;;  %v2784_v40 = vpack.c.bf16 %v1783_v24, %v1779_v12 }
 0x70b   :  { %v1562_v52 = vmul.f32 %v1560_v43, %v1553_v41  ;;  %v1558_v47 = vadd.f32 0.5, %v1557_v37  ;;  %v2816_v41 = vpack.c.bf16 %v1785_v29, %v1781_v28  ;;  %v1778_v43 = vld [vmem:[%s4176_s4 + $0xc0] sm:$0xff]  ;;  %v1784_v37 = vld [vmem:[%s4176_s4 + $0xf0] sm:$0xff] }
 0x70c   :  { %v1810_v28 = vld [vmem:[%s4176_s4 + $0x1c0] sm:$0xff] }
 0x70d   :  { %v3745_v53 = vadd.f32 %v1563_v44, %v1562_v52  ;;  %v1782_v44 = vld [vmem:[%s4176_s4 + $0xe0] sm:$0xff]  ;;  %v1780_v52 = vld [vmem:[%s4176_s4 + $0xd0] sm:$0xff] }
 0x70e   :  { %v2786_v48 = vpack.c.bf16 %v1782_v44, %v1778_v43  ;;  %v1814_v29 = vld [vmem:[%s4176_s4 + $0x1e0] sm:$0xff]  ;;  %v1816_v43 = vld [vmem:[%s4176_s4 + $0x1f0] sm:$0xff] }
 0x70f   :  { %2972 = vtanh.f32 %v3745_v53  ;;  %v2802_v44 = vpack.c.bf16 %v1814_v29, %v1810_v28  ;;  %v2000_v28 = vld [vmem:[%s4178_s6 + $0x40] sm:$0xff] }
 0x710   :  { %v2004_v29 = vld [vmem:[%s4178_s6 + $0x60] sm:$0xff] }
 0x719   :  { %v2973_v39 = vpop.eup %2972 }
 0x71a   :  { %v1566_v60 = vmul.f32 %v2973_v39, %v1558_v47  ;;  %v1787_v47 = vld [vmem:[%s4176_s4 + $0x108] sm:$0xff] }
 0x71b   :  { %v1791_v39 = vld [vmem:[%s4176_s4 + $0x128] sm:$0xff] }
 0x71c   :  { %v1568_v51 = vrot.slane %v1566_v60, 6  ;;  %v2818_v60 = vpack.c.bf16 %v1784_v37, %v1780_v52 }
 0x71e   :  { %1635 = vmatmul.mubr.f32.vlgmr.msra.gmra.mrb[16].mxu0 %v1568_v51  ;;  %1706 = vmatmul.mubr.f32.vlgmr.msra.gmra.mrb[16].mxu1 %v1568_v51  ;;  %v2788_v51 = vpack.c.bf16 %v1791_v39, %v1787_v47 }
 0x71f   :  { %1902 = vmatprep.mubr.f32.mxu0 %v3030_v5  ;;  %1972 = vmatprep.mubr.f32.mxu1 %v3030_v5 }
 0x720   :  { %2775 = vmatpush1.bf16.msra.mxu0 %v2774_v16  ;;  %2807 = vmatpush1.bf16.msra.mxu1 %v2806_v34  ;;  %v1795_v16 = vld [vmem:[%s4176_s4 + $0x148] sm:$0xff]  ;;  %v2822_v34 = vpack.c.bf16 %v1792_v1, %v1788_v15 }
 0x721   :  { %2777 = vmatprep.subr.bf16.mxu0 %v2776_v38  ;;  %2809 = vmatprep.subr.bf16.mxu1 %v2808_v26  ;;  %v2792_v25 = vpack.c.bf16 %v1799_v27, %v1795_v16  ;;  %v1798_v38 = vld [vmem:[%s4176_s4 + $0x160] sm:$0xff]  ;;  %v1803_v26 = vld [vmem:[%s4176_s4 + $0x188] sm:$0xff] }
 0x724   :  { %2779 = vmatpush1.bf16.msra.mxu0 %v2778_v30  ;;  %2811 = vmatpush1.bf16.msra.mxu1 %v2810_v36  ;;  %v1807_v30 = vld [vmem:[%s4176_s4 + $0x1a8] sm:$0xff]  ;;  %v2794_v36 = vpack.c.bf16 %v1798_v38, %v1794_v13 }
 0x725   :  { %2781 = vmatprep.subr.bf16.mxu0 %v2780_v50  ;;  %2813 = vmatprep.subr.bf16.mxu1 %v2812_v62  ;;  %v2796_v46 = vpack.c.bf16 %v1807_v30, %v1803_v26  ;;  %v1806_v50 = vld [vmem:[%s4176_s4 + $0x1a0] sm:$0xff]  ;;  %v1811_v62 = vld [vmem:[%s4176_s4 + $0x1c8] sm:$0xff] }
 0x726   :  { %v2798_v12 = vpack.c.bf16 %v1806_v50, %v1802_v49  ;;  %v1999_v49 = vld [vmem:[%s4178_s6 + $0x38] sm:$0xff]  ;;  %v1996_v50 = vld [vmem:[%s4178_s6 + $0x20] sm:$0xff] }
 0x728   :  { %2783 = vmatpush1.bf16.msra.mxu0 %v2782_v6  ;;  %2815 = vmatpush1.bf16.msra.mxu1 %v2814_v23  ;;  %v1815_v6 = vld [vmem:[%s4176_s4 + $0x1e8] sm:$0xff]  ;;  %v2830_v23 = vpack.c.bf16 %v1808_v61, %v1804_v57  ;;  %v1994_v61 = vld [vmem:[%s4178_s6 + $0x10] sm:$0xff] }
 0x729   :  { %2785 = vmatprep.subr.bf16.mxu0 %v2784_v40  ;;  %2817 = vmatprep.subr.bf16.mxu1 %v2816_v41  ;;  %v2800_v24 = vpack.c.bf16 %v1815_v6, %v1811_v62  ;;  %v2832_v40 = vpack.c.bf16 %v1817_v11, %v1813_v7  ;;  %v1812_v41 = vld [vmem:[%s4176_s4 + $0x1d0] sm:$0xff]  ;;  %v2001_v7 = vld [vmem:[%s4178_s6 + $0x48] sm:$0xff] }
 0x72a   :  { %v2834_v52 = vpack.c.bf16 %v1816_v43, %v1812_v41  ;;  %v1998_v62 = vld [vmem:[%s4178_s6 + $0x30] sm:$0xff]  ;;  %v2005_v11 = vld [vmem:[%s4178_s6 + $0x68] sm:$0xff]  ;;  %v2842_v41 = vpack.c.bf16 %v2004_v29, %v2000_v28  ;;  %v2044_v28 = vld [vmem:[%s4178_s6 + $0x1a0] sm:$0xff] }
 0x72b   :  { %v2870_v6 = vpack.c.bf16 %v1998_v62, %v1994_v61  ;;  %v2002_v43 = vld [vmem:[%s4178_s6 + $0x50] sm:$0xff] }
 0x72c   :  { %2787 = vmatpush1.bf16.msra.mxu0 %v2786_v48  ;;  %2819 = vmatpush1.bf16.msra.mxu1 %v2818_v60  ;;  %v2038_v61 = vld [vmem:[%s4178_s6 + $0x170] sm:$0xff] }
 0x72d   :  { %2789 = vmatprep.subr.bf16.mxu0 %v2788_v51  ;;  %2821 = vmatprep.subr.bf16.mxu1 %v2820_v20 }
 0x730   :  { %2791 = vmatpush1.bf16.msra.mxu0 %v2790_v19  ;;  %2823 = vmatpush1.bf16.msra.mxu1 %v2822_v34 }
 0x731   :  { %2793 = vmatprep.subr.bf16.mxu0 %v2792_v25  ;;  %2825 = vmatprep.subr.bf16.mxu1 %v2824_v17 }
 0x734   :  { %2795 = vmatpush1.bf16.msra.mxu0 %v2794_v36  ;;  %2827 = vmatpush1.bf16.msra.mxu1 %v2826_v45  ;;  %v1997_v36 = vld [vmem:[%s4178_s6 + $0x28] sm:$0xff]  ;;  %v1995_v45 = vld [vmem:[%s4178_s6 + $0x18] sm:$0xff] }
 0x735   :  { %2797 = vmatprep.subr.bf16.mxu0 %v2796_v46  ;;  %2829 = vmatprep.subr.bf16.mxu1 %v2828_v58  ;;  %v2868_v57 = vpack.c.bf16 %v1999_v49, %v1995_v45  ;;  %v2032_v49 = vld [vmem:[%s4178_s6 + $0x140] sm:$0xff] }
 0x738   :  { %2799 = vmatpush1.bf16.msra.mxu0 %v2798_v12  ;;  %2831 = vmatpush1.bf16.msra.mxu1 %v2830_v23  ;;  %v2003_v12 = vld [vmem:[%s4178_s6 + $0x58] sm:$0xff]  ;;  %v2840_v23 = vpack.c.bf16 %v2005_v11, %v2001_v7  ;;  %v2045_v7 = vld [vmem:[%s4178_s6 + $0x1a8] sm:$0xff] }
 0x739   :  { %2801 = vmatprep.subr.bf16.mxu0 %v2800_v24  ;;  %2833 = vmatprep.subr.bf16.mxu1 %v2832_v40  ;;  %v2007_v24 = vld [vmem:[%s4178_s6 + $0x78] sm:$0xff] }
 0x73a   :  { %v2872_v40 = vpack.c.bf16 %v2007_v24, %v2003_v12  ;;  %v2043_v11 = vld [vmem:[%s4178_s6 + $0x198] sm:$0xff]  ;;  %v2040_v24 = vld [vmem:[%s4178_s6 + $0x180] sm:$0xff] }
 0x73c   :  { %2803 = vmatpush1.bf16.msra.mxu0 %v2802_v44  ;;  %2835 = vmatpush1.bf16.msra.mxu1 %v2834_v52  ;;  %v2006_v44 = vld [vmem:[%s4178_s6 + $0x70] sm:$0xff] }
 0x73d   :  { %2869 = vmatprep.subr.bf16.mxu1 %v2868_v57  ;;  %v2874_v52 = vpack.c.bf16 %v2006_v44, %v2002_v43  ;;  %v2046_v43 = vld [vmem:[%s4178_s6 + $0x1b0] sm:$0xff]  ;;  %v2049_v44 = vld [vmem:[%s4178_s6 + $0x1c8] sm:$0xff] }
 0x7f1   :  { %v1636_v48 = vpop.f32.mrb[16].mxu0  ;;  %v1707_v37 = vpop.f32.mrb[16].mxu1 }
 0x7f2   :  { %v1716_v47 = vrot.slane %v1636_v48, 1  ;;  %v1718_v39 = vrot.slane %v1707_v37, 1  ;;  %v1638_v60 = vpop.f32.mrb[17].mxu0  ;;  %v1709_v51 = vpop.f32.mrb[17].mxu1  ;;  %v2009_v48 = vld [vmem:[%s4178_s6 + $0x88] sm:$0xff] }
 0x7f3   :  { %v1717_v8 = vrot.slane %v1638_v60, 1  ;;  %v1719_v2 = vrot.slane %v1709_v51, 1  ;;  %v2013_v37 = vld [vmem:[%s4178_s6 + $0xa8] sm:$0xff]  ;;  %v2015_v60 = vld [vmem:[%s4178_s6 + $0xb8] sm:$0xff]  ;;  %v2008_v51 = vld [vmem:[%s4178_s6 + $0x80] sm:$0xff] }
 0x7f4   :  { %v1724_v63 = vadd.f32 %v1716_v47, %v3435_v54  ;;  %v1726_v20 = vadd.f32 %v1718_v39, %v3439_v56  ;;  %v2011_v47 = vld [vmem:[%s4178_s6 + $0x98] sm:$0xff]  ;;  %v2844_v39 = vpack.c.bf16 %v2013_v37, %v2009_v48  ;;  %v2053_v48 = vld [vmem:[%s4178_s6 + $0x1e8] sm:$0xff] }
 0x7f5   :  { %v1725_v10 = vadd.f32 %v1717_v8, %v3437_v55  ;;  %v1727_v15 = vadd.f32 %v1719_v2, %v3441_v59  ;;  %v2012_v8 = vld [vmem:[%s4178_s6 + $0xa0] sm:$0xff]  ;;  %v2876_v2 = vpack.c.bf16 %v2015_v60, %v2011_v47  ;;  %v2051_v37 = vld [vmem:[%s4178_s6 + $0x1d8] sm:$0xff] }
 0x7f6   :  { %v1728_v1 = vadd.f32 %v1724_v63, %v3449_v3  ;;  %v1730_v21 = vadd.f32 %v1726_v20, %v3461_v32  ;;  %v2846_v63 = vpack.c.bf16 %v2012_v8, %v2008_v51  ;;  %v2010_v20 = vld [vmem:[%s4178_s6 + $0x90] sm:$0xff]  ;;  %v2055_v47 = vld [vmem:[%s4178_s6 + $0x1f8] sm:$0xff]  ;;  %v2048_v51 = vld [vmem:[%s4178_s6 + $0x1c0] sm:$0xff] }
 0x7f7   :  { %v1729_v19 = vadd.f32 %v1725_v10, %v3453_v14  ;;  %v1731_v34 = vadd.f32 %v1727_v15, %v3468_v42  ;;  %v1746_v14 = vrot.slane %v3745_v53, 7  ;;  %v1993_v53 = vld [vmem:[%s4178_s6 + $0x8] sm:$0xff]  ;;  %v2014_v10 = vld [vmem:[%s4178_s6 + $0xb0] sm:$0xff]  ;;  %v2896_v60 = vpack.c.bf16 %v2055_v47, %v2051_v37  ;;  %v2052_v8 = vld [vmem:[%s4178_s6 + $0x1e0] sm:$0xff] }
 0x7f8   :  { %v1732_v16 = vmul.f32 0.5, %v1728_v1  ;;  %v2836_v46 = vpack.c.bf16 %v1997_v36, %v1993_v53  ;;  %v2878_v15 = vpack.c.bf16 %v2014_v10, %v2010_v20  ;;  %v2017_v1 = vld [vmem:[%s4178_s6 + $0xc8] sm:$0xff]  ;;  %v2035_v36 = vld [vmem:[%s4178_s6 + $0x158] sm:$0xff]  ;;  %v2054_v20 = vld [vmem:[%s4178_s6 + $0x1f0] sm:$0xff] }
 0x7f9   :  { %v1736_v27 = vmul.f32 0.5, %v1729_v19  ;;  %v1741_v54 = vmul.f32 0.5, %v1731_v34  ;;  %v2021_v19 = vld [vmem:[%s4178_s6 + $0xe8] sm:$0xff]  ;;  %v2016_v34 = vld [vmem:[%s4178_s6 + $0xc0] sm:$0xff] }
 0x7fa   :  { %2974 = vtanh.f32 %v1732_v16  ;;  %2837 = vmatprep.subr.bf16.mxu0 %v2836_v46  ;;  %v2019_v16 = vld [vmem:[%s4178_s6 + $0xd8] sm:$0xff]  ;;  %v2037_v53 = vld [vmem:[%s4178_s6 + $0x168] sm:$0xff] }
 0x7fb   :  { %2976 = vtanh.f32 %v1736_v27  ;;  %v2848_v27 = vpack.c.bf16 %v2021_v19, %v2017_v1  ;;  %v2039_v46 = vld [vmem:[%s4178_s6 + $0x178] sm:$0xff] }
 0x7fc   :  { %2978 = vtanh.f32 %v1730_v21  ;;  %v2023_v21 = vld [vmem:[%s4178_s6 + $0xf8] sm:$0xff] }
 0x7fd   :  { %2980 = vtanh.f32 %v1741_v54  ;;  %v2020_v54 = vld [vmem:[%s4178_s6 + $0xe0] sm:$0xff] }
 0x804   :  { %v2975_v25 = vpop.eup %2974 }
 0x805   :  { %v2977_v56 = vpop.eup %2976  ;;  %v1734_v9 = vmul.f32 0.5, %v2975_v25  ;;  %v2880_v25 = vpack.c.bf16 %v2023_v21, %v2019_v16 }
 0x806   :  { %v1738_v55 = vmul.f32 0.5, %v2977_v56  ;;  %v2979_v13 = vpop.eup %2978  ;;  %v2850_v56 = vpack.c.bf16 %v2020_v54, %v2016_v34 }
 0x807   :  { %v1735_v59 = vadd.f32 0.5, %v1734_v9  ;;  %v2981_v32 = vpop.eup %2980  ;;  %v2018_v9 = vld [vmem:[%s4178_s6 + $0xd0] sm:$0xff] }
 0x808   :  { %v1739_v3 = vadd.f32 0.5, %v1738_v55  ;;  %v1743_v22 = vmul.f32 0.5, %v2981_v32  ;;  %v2022_v55 = vld [vmem:[%s4178_s6 + $0xf0] sm:$0xff]  ;;  %v2028_v32 = vld [vmem:[%s4178_s6 + $0x120] sm:$0xff] }
 0x809   :  { %v1749_v38 = vmul.f32 %v2979_v13, %v1735_v59  ;;  %v2882_v59 = vpack.c.bf16 %v2022_v55, %v2018_v9  ;;  %v2025_v13 = vld [vmem:[%s4178_s6 + $0x108] sm:$0xff] }
 0x80a   :  { %v1748_v17 = vmul.f32 %v1746_v14, %v1739_v3  ;;  %v1744_v26 = vadd.f32 0.5, %v1743_v22  ;;  %v2029_v3 = vld [vmem:[%s4178_s6 + $0x128] sm:$0xff]  ;;  %v2027_v14 = vld [vmem:[%s4178_s6 + $0x118] sm:$0xff] }
 0x80c   :  { %v1750_v18 = vadd.f32 %v1749_v38, %v1748_v17  ;;  %v2852_v38 = vpack.c.bf16 %v2029_v3, %v2025_v13  ;;  %v2031_v17 = vld [vmem:[%s4178_s6 + $0x138] sm:$0xff] }
 0x80d   :  { %v2884_v22 = vpack.c.bf16 %v2031_v17, %v2027_v14 }
 0x80e   :  { %2982 = vtanh.f32 %v1750_v18  ;;  %v2024_v18 = vld [vmem:[%s4178_s6 + $0x100] sm:$0xff] }
 0x818   :  { %v2983_v30 = vpop.eup %2982 }
 0x819   :  { %v1752_v42 = vmul.f32 %v2983_v30, %v1744_v26  ;;  %v2854_v26 = vpack.c.bf16 %v2028_v32, %v2024_v18  ;;  %v2026_v30 = vld [vmem:[%s4178_s6 + $0x110] sm:$0xff] }
 0x81b   :  { %2984 = vtanh.f32 %v1752_v42  ;;  %v2030_v42 = vld [vmem:[%s4178_s6 + $0x130] sm:$0xff] }
 0x825   :  { %v2985_v31 = vpop.eup %2984 }
 0x826   :  { %v1820_v35 = vrot.slane %v2985_v31, 7  ;;  %v2886_v31 = vpack.c.bf16 %v2030_v42, %v2026_v30 }
 0x828   :  { %1903 = vmatmul.mubr.f32.vlgmr.msra.gmra.mrb[18].mxu0 %v1820_v35  ;;  %1973 = vmatmul.mubr.f32.vlgmr.msra.gmra.mrb[18].mxu1 %v1820_v35  ;;  %v2033_v35 = vld [vmem:[%s4178_s6 + $0x148] sm:$0xff] }
 0x829   :  { %2137 = vmatprep.mubr.f32.mxu0 %v3030_v5  ;;  %2207 = vmatprep.mubr.f32.mxu1 %v3030_v5  ;;  %v1992_v5 = vld [vmem:[%s4178_s6] sm:$0xff]  ;;  %v2856_v45 = vpack.c.bf16 %v2037_v53, %v2033_v35 }
 0x82a   :  { %v2838_v58 = vpack.c.bf16 %v1996_v50, %v1992_v5  ;;  %2871 = vmatpush1.bf16.msra.mxu1 %v2870_v6  ;;  %v2036_v5 = vld [vmem:[%s4178_s6 + $0x160] sm:$0xff]  ;;  %v2888_v50 = vpack.c.bf16 %v2039_v46, %v2035_v36  ;;  %v2041_v6 = vld [vmem:[%s4178_s6 + $0x188] sm:$0xff] }
 0x82b   :  { %2873 = vmatprep.subr.bf16.mxu1 %v2872_v40  ;;  %v2858_v57 = vpack.c.bf16 %v2036_v5, %v2032_v49  ;;  %v2860_v12 = vpack.c.bf16 %v2045_v7, %v2041_v6  ;;  %v2862_v40 = vpack.c.bf16 %v2044_v28, %v2040_v24 }
 0x82c   :  { %2839 = vmatpush1.bf16.msra.mxu0 %v2838_v58  ;;  %v2034_v58 = vld [vmem:[%s4178_s6 + $0x150] sm:$0xff] }
 0x82d   :  { %2841 = vmatprep.subr.bf16.mxu0 %v2840_v23  ;;  %v2890_v62 = vpack.c.bf16 %v2038_v61, %v2034_v58  ;;  %v2047_v23 = vld [vmem:[%s4178_s6 + $0x1b8] sm:$0xff] }
 0x82e   :  { %2875 = vmatpush1.bf16.msra.mxu1 %v2874_v52  ;;  %v2892_v29 = vpack.c.bf16 %v2047_v23, %v2043_v11 }
 0x82f   :  { %2877 = vmatprep.subr.bf16.mxu1 %v2876_v2  ;;  %v2050_v2 = vld [vmem:[%s4178_s6 + $0x1d0] sm:$0xff] }
 0x830   :  { %2843 = vmatpush1.bf16.msra.mxu0 %v2842_v41  ;;  %v2042_v41 = vld [vmem:[%s4178_s6 + $0x190] sm:$0xff]  ;;  %v2898_v10 = vpack.c.bf16 %v2054_v20, %v2050_v2 }
 0x831   :  { %2845 = vmatprep.subr.bf16.mxu0 %v2844_v39  ;;  %v2894_v52 = vpack.c.bf16 %v2046_v43, %v2042_v41  ;;  %v2864_v39 = vpack.c.bf16 %v2053_v48, %v2049_v44  ;;  %v2232_v43 = vld [vmem:[#allocation2] sm:$0x1] }
 0x832   :  { %2879 = vmatpush1.bf16.msra.mxu1 %v2878_v15  ;;  %v1818_v15 = vld [vmem:[%s4177_s5] sm:$0xf] }
 0x833   :  { %2881 = vmatprep.subr.bf16.mxu1 %v2880_v25  ;;  %v1826_v1 = vrot.slane %v1818_v15, %v3443_v0  ;;  %v1830_v21 = vrot.slane %v1818_v15, %v3451_v4  ;;  %v1834_v25 = vrot.slane %v1818_v15, %v3463_v33 }
 0x834   :  { %2847 = vmatpush1.bf16.msra.mxu0 %v2846_v63  ;;  %v2866_v63 = vpack.c.bf16 %v2052_v8, %v2048_v51 }
 0x835   :  { %2849 = vmatprep.subr.bf16.mxu0 %v2848_v27 }
 0x836   :  { %2883 = vmatpush1.bf16.msra.mxu1 %v2882_v59 }
 0x837   :  { %2885 = vmatprep.subr.bf16.mxu1 %v2884_v22 }
 0x838   :  { %2851 = vmatpush1.bf16.msra.mxu0 %v2850_v56 }
 0x839   :  { %2853 = vmatprep.subr.bf16.mxu0 %v2852_v38 }
 0x83a   :  { %2887 = vmatpush1.bf16.msra.mxu1 %v2886_v31  ;;  %v2056_v31 = vld [vmem:[%s4179_s7] sm:$0xf] }
 0x83b   :  { %2889 = vmatprep.subr.bf16.mxu1 %v2888_v50  ;;  %v2061_v35 = vrot.slane %v2056_v31, %v3443_v0  ;;  %v2065_v46 = vrot.slane %v2056_v31, %v3451_v4  ;;  %v2069_v50 = vrot.slane %v2056_v31, %v3463_v33  ;;  %v2226_v33 = vld [vmem:[%s4180_s8] sm:$0x1]  ;;  %s3010_s8 = scalar_lea.vmem %s2247_s15, 32 }
 0x83c   :  { %2855 = vmatpush1.bf16.msra.mxu0 %v2854_v26  ;;  %p3012_p2 = scmp.lt.s32.totalorder %s3010_s8, %s3006_s16 }
 0x83d   :  { %2857 = vmatprep.subr.bf16.mxu0 %v2856_v45 }
 0x83e   :  { %2891 = vmatpush1.bf16.msra.mxu1 %v2890_v62  ;;  %p3013_p3 = por %p3012_p2, %p3011_p1 }
 0x83f   :  { %2893 = vmatprep.subr.bf16.mxu1 %v2892_v29 }
 0x840   :  { %2859 = vmatpush1.bf16.msra.mxu0 %v2858_v57  ;;  %p3014_p4 = pnand %p3013_p3, %p3007_p0 }
 0x841   :  { %2861 = vmatprep.subr.bf16.mxu0 %v2860_v12 }
 0x842   :  { %2895 = vmatpush1.bf16.msra.mxu1 %v2894_v52 }
 0x843   :  { %2897 = vmatprep.subr.bf16.mxu1 %v2896_v60 }
 0x844   :  { %2863 = vmatpush1.bf16.msra.mxu0 %v2862_v40 }
 0x845   :  { %2865 = vmatprep.subr.bf16.mxu0 %v2864_v39 }
 0x846   :  { %2899 = vmatpush1.bf16.msra.mxu1 %v2898_v10 }
 0x848   :  { %2867 = vmatpush1.bf16.msra.mxu0 %v2866_v63 }
 0x8fb   :  { %v1904_v19 = vpop.f32.mrb[18].mxu0  ;;  %v1974_v16 = vpop.f32.mrb[18].mxu1 }
 0x8fc   :  { %v1905_v27 = vadd.f32 %v1904_v19, %v1826_v1  ;;  %v1906_v34 = vpop.f32.mrb[19].mxu0  ;;  %v1976_v54 = vpop.f32.mrb[19].mxu1  ;;  %v1975_v9 = vadd.f32 %v1974_v16, %v1830_v21 }
 0x8fd   :  { %v1977_v55 = vadd.f32 %v1976_v54, %v1834_v25 }
 0x8fe   :  { %v1979_v56 = vmul.f32 0.5, %v1905_v27 }
 0x8ff   :  { %v1984_v59 = vmul.f32 0.5, %v1977_v55 }
 0x900   :  { %2986 = vtanh.f32 %v1979_v56 }
 0x901   :  { %2988 = vtanh.f32 %v1975_v9 }
 0x902   :  { %2990 = vtanh.f32 %v1984_v59 }
 0x90a   :  { %v2987_v13 = vpop.eup %2986 }
 0x90b   :  { %v1981_v3 = vmul.f32 0.5, %v2987_v13  ;;  %v2989_v38 = vpop.eup %2988 }
 0x90c   :  { %v2991_v18 = vpop.eup %2990 }
 0x90d   :  { %v1982_v14 = vadd.f32 0.5, %v1981_v3  ;;  %v1986_v32 = vmul.f32 0.5, %v2991_v18 }
 0x90f   :  { %v1988_v17 = vmul.f32 %v2989_v38, %v1982_v14  ;;  %v1987_v22 = vadd.f32 0.5, %v1986_v32 }
 0x911   :  { %2992 = vtanh.f32 %v1988_v17 }
 0x91b   :  { %v2993_v26 = vpop.eup %2992 }
 0x91c   :  { %v1990_v30 = vmul.f32 %v2993_v26, %v1987_v22 }
 0x91e   :  { %2994 = vtanh.f32 %v1990_v30 }
 0x928   :  { %v2995_v42 = vpop.eup %2994 }
 0x929   :  { %2138 = vmatmul.mubr.f32.vlgmr.msra.gmra.mrb[20].mxu0 %v2995_v42  ;;  %2208 = vmatmul.mubr.f32.vlgmr.msra.gmra.mrb[20].mxu1 %v2995_v42 }
 0x9fc   :  { %v2139_v53 = vpop.f32.mrb[20].mxu0  ;;  %v2209_v36 = vpop.f32.mrb[20].mxu1 }
 0x9fd   :  { %v2140_v45 = vadd.f32 %v2139_v53, %v2061_v35  ;;  %v2141_v49 = vpop.f32.mrb[21].mxu0  ;;  %v2211_v5 = vpop.f32.mrb[21].mxu1  ;;  %v2210_v58 = vadd.f32 %v2209_v36, %v2065_v46 }
 0x9fe   :  { %v2212_v61 = vadd.f32 %v2211_v5, %v2069_v50 }
 0x9ff   :  { %v2214_v57 = vmul.f32 0.5, %v2140_v45 }
 0xa00   :  { %v2219_v62 = vmul.f32 0.5, %v2212_v61 }
 0xa01   :  { %2996 = vtanh.f32 %v2214_v57 }
 0xa02   :  { %2998 = vtanh.f32 %v2210_v58 }
 0xa03   :  { %3000 = vtanh.f32 %v2219_v62 }
 0xa0b   :  { %v2997_v6 = vpop.eup %2996 }
 0xa0c   :  { %v2216_v7 = vmul.f32 0.5, %v2997_v6  ;;  %v2999_v0 = vpop.eup %2998 }
 0xa0d   :  { %v3001_v23 = vpop.eup %3000 }
 0xa0e   :  { %v2217_v11 = vadd.f32 0.5, %v2216_v7  ;;  %v2221_v24 = vmul.f32 0.5, %v3001_v23 }
 0xa10   :  { %v2223_v12 = vmul.f32 %v2999_v0, %v2217_v11  ;;  %v2222_v4 = vadd.f32 0.5, %v2221_v24 }
 0xa12   :  { %3002 = vtanh.f32 %v2223_v12 }
 0xa1c   :  { %v3003_v28 = vpop.eup %3002 }
 0xa1d   :  { %v2225_v29 = vmul.f32 %v3003_v28, %v2222_v4 }
 0xa1f   :  { %v2227_v40 = vmul.f32 %v2226_v33, %v2225_v29 }
 0xa21   :  { %v2229_v41 = vsel %vm2228_vm2, %v2227_v40, 0.0 }
 0xa22   :  { %2230 = vadd.xlane.f32.xlu0 %v2229_v41 }
 0xaaf   :  { %v2231_v44 = vpop.xlane.xlu0 %2230 }
 0xab0   :  { %v2233_v52 = vadd.f32 %v2232_v43, %v2231_v44 }
 0xab2   :  { %v2234_v48 = vmul.f32 0.5, %v2233_v52 }
 0xab4   :  { %3004 = vtanh.f32 %v2234_v48 }
 0xabe   :  { %v3005_v37 = vpop.eup %3004 }
 0xabf   :  { %v2236_v47 = vmul.f32 0.5, %v3005_v37 }
 0xac1   :  { %v2237_v39 = vadd.f32 0.5, %v2236_v47 }
 0xac3   :  { %2239 = vst.msk [vmem:[#allocation3] sm:$0x1] %vm2238_vm3, %v2237_v39 }
 0xac4   :  { %3017 = shalt.err (!%p3014_p4)
}
 0xac5   :  { %s3018_s19 = scalar_lea.hbm %s4182_s10, 16 }
 0xac6   :  { %p3019_p5 = scmp.ne.s32.totalorder %s4182_s10, %s3018_s19  ;;  %p3022_p6 = scmp.lt.u32.totalorder %s3018_s19, %s4182_s10 }
 0xac8   :  { %p3024_p7 = pnand %p3022_p6, %p3019_p5 }
 0xaca   :  { %3027 = shalt.err (!%p3024_p7)
}
 0xacb   :  { %2249 = dma.vmem_to_hbm [thread:$0]  %s2247_s15, 16, %s4182_s10, [#allocation4]  }
 0xacc   :  { %3028 = dma.done.wait [#allocation4], 16  }
 0xacd   :  { %3029 = vsyncadd [#allocation4], 4294967280 }
 0xace   :  { %2253 = vsyncpa [#allocation4], 1 }

</bundles_post_ra>
